<compile_context>
chip_gen: v7x
topology: tpu7x:2x2x1
jax: 0.10.0
libtpu: 0.0.40
codegen_flags: <defaults>
</compile_context>

<pallas_src>
import math
from functools import reduce

import jax
import jax.numpy as jnp
from jax.experimental import pallas as pl
from jax.experimental.pallas import tpu as pltpu

STATE_SHAPE = (4, 16, 16)          # (C, H, W)
NUM_ACTIONS = 8
NUM_ATOMS = 51
HIDDEN = 512
FLAT = reduce(lambda a, b: a * b, STATE_SHAPE)   # 1024


def _round_up(v, m):
    return ((v + m - 1) // m) * m


def _dqn_kernel(x_ref, w1_ref, b1_ref, w2_ref, b2_ref, w3_ref, b3_ref,
                seg_ref, segt_ref, out_ref):
    # ---- MLP: Linear -> ReLU -> Linear -> ReLU -> Linear (bf16 MXU, f32 acc) ----
    x = x_ref[...].astype(jnp.bfloat16)                                   # (TB, 1024)
    h1 = jnp.dot(x, w1_ref[...], preferred_element_type=jnp.float32) + b1_ref[...]
    h1 = jnp.maximum(h1, 0.0)
    h2 = jnp.dot(h1.astype(jnp.bfloat16), w2_ref[...],
                 preferred_element_type=jnp.float32) + b2_ref[...]
    h2 = jnp.maximum(h2, 0.0)
    logits = jnp.dot(h2.astype(jnp.bfloat16), w3_ref[...],
                     preferred_element_type=jnp.float32) + b3_ref[...]    # (TB, 512)

    # ---- Vectorized segmented softmax (per-action atom distribution) ----
    # Row-wide max: the shift cancels inside each per-action softmax; padded
    # atoms carry a -1e30 bias so exp() == 0 there.  exp kept in f32 (v5e has
    # no bf16 EUP); the denominator matmul runs bf16 on the MXU.
    m = jnp.max(logits, axis=-1, keepdims=True)                           # XLU reduce
    e = jnp.exp(logits - m)                                               # EUP, (TB, 512)
    denom = jnp.dot(e.astype(jnp.bfloat16), seg_ref[...],
                    preferred_element_type=jnp.float32)                   # (TB, A) on MXU
    # Guard: if an entire action underflows under the shared row max, avoid
    # 0 * inf = NaN (that action degrades to all-zero probs instead).
    denom = jnp.maximum(denom, 1e-30)
    inv = pl.reciprocal(denom, approx=True)                               # EUP
    inv = inv * (2.0 - denom * inv)       # one Newton step -> near-exact 1/denom
    inv_cols = jnp.dot(inv, segt_ref[...],
                       preferred_element_type=jnp.float32)                # (TB, 512) scatter
    out_ref[...] = (e * inv_cols).astype(out_ref.dtype)   # single lane-dense store


def prepare_params(params, *, num_actions=NUM_ACTIONS, num_atoms=NUM_ATOMS):
    """One-time param prep.

    Pads each action's atoms (51 -> 64 for A=8) so the head width is a
    128-lane multiple AND the padded output reshapes to (B, A, atoms_pad)
    for free.  Weights are cast to bf16 for the MXU; biases stay f32 with a
    -1e30 bias on pad atoms (exp() == 0 there).  Also builds the one-hot
    segment matrices used by the in-kernel segmented softmax.
    """
    w1, b1, w2, b2, w3, b3 = params
    hidden = w3.shape[0]

    # Smallest per-action pad so num_actions * atoms_pad is a multiple of 128.
    step = 128 // math.gcd(num_actions, 128)
    atoms_pad = _round_up(num_atoms, step)                 # 64 for (A=8, K=51)
    padded_cols = num_actions * atoms_pad                  # 512
    pad = atoms_pad - num_atoms

    w3p = jnp.pad(w3.reshape(hidden, num_actions, num_atoms),
                  ((0, 0), (0, 0), (0, pad))).reshape(hidden, padded_cols)
    b3p = jnp.pad(b3.reshape(1, num_actions, num_atoms),
                  ((0, 0), (0, 0), (0, pad)),
                  constant_values=-1e30).reshape(1, padded_cols)

    # Column c belongs to action c // atoms_pad.
    col = jnp.arange(padded_cols)
    seg_id = col // atoms_pad
    seg = (seg_id[:, None] == jnp.arange(num_actions)[None, :]).astype(jnp.float32)
    seg_t = seg.T                                          # (A, padded_cols)

    return (w1.astype(jnp.bfloat16), b1.astype(jnp.float32),
            w2.astype(jnp.bfloat16), b2.astype(jnp.float32),
            w3p.astype(jnp.bfloat16), b3p.astype(jnp.float32),
            seg.astype(jnp.bfloat16),          # bf16 operand for the denom matmul
            seg_t.astype(jnp.float32))         # f32 scatter (exact 0/1)


def categorical_dqn_forward(state, prepared_params, *, num_actions=NUM_ACTIONS,
                            num_atoms=NUM_ATOMS, block_rows=512,
                            out_dtype=jnp.float32, return_padded=False):
    """state: (B, C, H, W).  Returns (B, num_actions, num_atoms) by default,
    or the zero-padded (B, num_actions, atoms_pad) distribution if
    return_padded=True (pad atoms have exactly 0 probability)."""
    w1, b1, w2, b2, w3p, b3p, seg, seg_t = prepared_params
    b = state.shape[0]
    flat = w1.shape[0]
    hidden = w1.shape[1]
    padded_cols = w3p.shape[1]
    atoms_pad = padded_cols // num_actions

    # == torch.flatten(state, 1); keep incoming dtype (kernel casts to bf16).
    x = state.reshape(b, flat)

    # Batch tiling: TB is a multiple of 8 (sublane aligned); pad rows as needed.
    tb = min(block_rows, _round_up(b, 8))
    b_pad = _round_up(b, tb)
    if b_pad != b:
        x = jnp.pad(x, ((0, b_pad - b), (0, 0)))

    def const(shape):
        # Grid-invariant operand: constant block index => DMA'd once, VMEM resident.
        return pl.BlockSpec(shape, lambda i: (0, 0))

    dist_flat = pl.pallas_call(
        _dqn_kernel,
        out_shape=jax.ShapeDtypeStruct((b_pad, padded_cols), out_dtype),
        grid=(b_pad // tb,),
        in_specs=[
            pl.BlockSpec((tb, flat), lambda i: (i, 0)),   # x: tiled/pipelined over batch
            const((flat, hidden)),                        # w1 (bf16)
            const((1, hidden)),                           # b1
            const((hidden, hidden)),                      # w2 (bf16)
            const((1, hidden)),                           # b2
            const((hidden, padded_cols)),                 # w3 (bf16, per-action padded)
            const((1, padded_cols)),                      # b3 (padded, -1e30 pad atoms)
            const((padded_cols, num_actions)),            # segment one-hot (bf16, reduce)
            const((num_actions, padded_cols)),            # its transpose (f32, scatter)
        ],
        out_specs=pl.BlockSpec((tb, padded_cols), lambda i: (i, 0)),
        compiler_params=pltpu.CompilerParams(
            dimension_semantics=("parallel",),            # megacore sharding
            vmem_limit_bytes=64 * 1024 * 1024),           # allow tb up to ~1024 on v5e/v6e
    )(x, w1, b1, w2, b2, w3p, b3p, seg, seg_t)

    # Free metadata reshape thanks to the per-action-64 layout.
    dist_pad = dist_flat.reshape(b_pad, num_actions, atoms_pad)
    if return_padded:
        return dist_pad[:b]
    # Exact module semantics: drop the (all-zero) pad atoms.
    return dist_pad[:b, :, :num_atoms]


def init_params(key):
    """Deterministic synthetic parameters (shapes match the PyTorch module)."""
    ks = jax.random.split(key, 6)

    def lin(kw, kb, fan_in, fan_out):
        bound = 1.0 / (fan_in ** 0.5)
        w = jax.random.uniform(kw, (fan_in, fan_out), jnp.float32, -bound, bound)
        bvec = jax.random.uniform(kb, (1, fan_out), jnp.float32, -bound, bound)
        return w, bvec

    w1, b1 = lin(ks[0], ks[1], FLAT, HIDDEN)
    w2, b2 = lin(ks[2], ks[3], HIDDEN, HIDDEN)
    w3, b3 = lin(ks[4], ks[5], HIDDEN, NUM_ACTIONS * NUM_ATOMS)
    return (w1, b1, w2, b2, w3, b3)


def _reference(state, params):
    x = state.reshape(state.shape[0], -1)
    w1, b1, w2, b2, w3, b3 = params
    h1 = jnp.maximum(x @ w1 + b1, 0.0)
    h2 = jnp.maximum(h1 @ w2 + b2, 0.0)
    logits = h2 @ w3 + b3
    d = jax.nn.softmax(logits.reshape(-1, NUM_ATOMS), axis=-1)
    return d.reshape(-1, NUM_ACTIONS, NUM_ATOMS)


if __name__ == "__main__":
    key = jax.random.PRNGKey(0)
    k_state, k_params = jax.random.split(key)
    state = jax.random.normal(k_state, (2,) + STATE_SHAPE, dtype=jnp.float32)
    params = init_params(k_params)
    prepped = prepare_params(params)

    dist = categorical_dqn_forward(state, prepped)
    dist = jax.block_until_ready(dist)

    ref = _reference(state, params)

    assert dist.shape == (2, NUM_ACTIONS, NUM_ATOMS)
    assert bool(jnp.all(jnp.isfinite(dist)))
    # bf16 MXU inputs (incl. the bf16 denominator matmul) + Newton-refined
    # reciprocal => rows sum to 1 well within 1e-2; values match the pure-f32
    # reference to ~1e-2 (structural errors would be O(0.1-1)).
    assert jnp.allclose(jnp.sum(dist, axis=-1), 1.0, atol=1e-2)
    assert jnp.allclose(dist, ref, atol=2e-2)

    print("KERNEL_OK")
</pallas_src>

<mosaic_0001>
module attributes {stable_mosaic.version = 11 : i64} {
  func.func @_dqn_kernel(%arg0: i32, %arg1: memref<8x1024xf32, #tpu.memory_space<vmem>>, %arg2: memref<1024x512xbf16, #tpu.memory_space<vmem>>, %arg3: memref<1x512xf32, #tpu.memory_space<vmem>>, %arg4: memref<512x512xbf16, #tpu.memory_space<vmem>>, %arg5: memref<1x512xf32, #tpu.memory_space<vmem>>, %arg6: memref<512x512xbf16, #tpu.memory_space<vmem>>, %arg7: memref<1x512xf32, #tpu.memory_space<vmem>>, %arg8: memref<512x8xbf16, #tpu.memory_space<vmem>>, %arg9: memref<8x512xf32, #tpu.memory_space<vmem>>, %arg10: memref<8x512xf32, #tpu.memory_space<vmem>>) attributes {dimension_semantics = [#tpu.dimension_semantics<parallel>], iteration_bounds = array<i64: 1>, scalar_prefetch = 0 : i64, scratch_operands = 0 : i64, tpu.core_type = #tpu.core_type<tc>, window_params = [{transform_indices = @transform_0, window_bounds = array<i64: 8, 1024>}, {pipeline_mode = #tpu.pipeline_mode<synchronous>, transform_indices = @transform_1, window_bounds = array<i64: 1024, 512>}, {pipeline_mode = #tpu.pipeline_mode<synchronous>, transform_indices = @transform_2, window_bounds = array<i64: 1, 512>}, {pipeline_mode = #tpu.pipeline_mode<synchronous>, transform_indices = @transform_3, window_bounds = array<i64: 512, 512>}, {pipeline_mode = #tpu.pipeline_mode<synchronous>, transform_indices = @transform_4, window_bounds = array<i64: 1, 512>}, {pipeline_mode = #tpu.pipeline_mode<synchronous>, transform_indices = @transform_5, window_bounds = array<i64: 512, 512>}, {pipeline_mode = #tpu.pipeline_mode<synchronous>, transform_indices = @transform_6, window_bounds = array<i64: 1, 512>}, {pipeline_mode = #tpu.pipeline_mode<synchronous>, transform_indices = @transform_7, window_bounds = array<i64: 512, 8>}, {pipeline_mode = #tpu.pipeline_mode<synchronous>, transform_indices = @transform_8, window_bounds = array<i64: 8, 512>}, {transform_indices = @transform_9, window_bounds = array<i64: 8, 512>}]} {
    %c0 = arith.constant 0 : index
    %c0_0 = arith.constant 0 : index
    %0 = vector.load %arg1[%c0, %c0_0] : memref<8x1024xf32, #tpu.memory_space<vmem>>, vector<8x1024xf32>
    %1 = arith.truncf %0 : vector<8x1024xf32> to vector<8x1024xbf16>
    %c0_1 = arith.constant 0 : index
    %c0_2 = arith.constant 0 : index
    %2 = vector.load %arg2[%c0_1, %c0_2] : memref<1024x512xbf16, #tpu.memory_space<vmem>>, vector<1024x512xbf16>
    %cst = arith.constant dense<0.000000e+00> : vector<8x512xf32>
    %3 = tpu.matmul %1, %2, %cst {dimension_numbers = #tpu.dot_dimension_numbers<[1], [0], [0], [1], [0, 0, 1, 1], [], []>} : vector<8x1024xbf16>, vector<1024x512xbf16>, vector<8x512xf32> -> vector<8x512xf32>
    %c0_3 = arith.constant 0 : index
    %c0_4 = arith.constant 0 : index
    %4 = vector.load %arg3[%c0_3, %c0_4] : memref<1x512xf32, #tpu.memory_space<vmem>>, vector<1x512xf32>
    %5 = vector.broadcast %4 : vector<1x512xf32> to vector<8x512xf32>
    %6 = arith.addf %3, %5 : vector<8x512xf32>
    %cst_5 = arith.constant 0.000000e+00 : f32
    %7 = vector.broadcast %cst_5 : f32 to vector<8x512xf32>
    %8 = arith.maximumf %6, %7 : vector<8x512xf32>
    %9 = arith.truncf %8 : vector<8x512xf32> to vector<8x512xbf16>
    %c0_6 = arith.constant 0 : index
    %c0_7 = arith.constant 0 : index
    %10 = vector.load %arg4[%c0_6, %c0_7] : memref<512x512xbf16, #tpu.memory_space<vmem>>, vector<512x512xbf16>
    %cst_8 = arith.constant dense<0.000000e+00> : vector<8x512xf32>
    %11 = tpu.matmul %9, %10, %cst_8 {dimension_numbers = #tpu.dot_dimension_numbers<[1], [0], [0], [1], [0, 0, 1, 1], [], []>} : vector<8x512xbf16>, vector<512x512xbf16>, vector<8x512xf32> -> vector<8x512xf32>
    %c0_9 = arith.constant 0 : index
    %c0_10 = arith.constant 0 : index
    %12 = vector.load %arg5[%c0_9, %c0_10] : memref<1x512xf32, #tpu.memory_space<vmem>>, vector<1x512xf32>
    %13 = vector.broadcast %12 : vector<1x512xf32> to vector<8x512xf32>
    %14 = arith.addf %11, %13 : vector<8x512xf32>
    %cst_11 = arith.constant 0.000000e+00 : f32
    %15 = vector.broadcast %cst_11 : f32 to vector<8x512xf32>
    %16 = arith.maximumf %14, %15 : vector<8x512xf32>
    %17 = arith.truncf %16 : vector<8x512xf32> to vector<8x512xbf16>
    %c0_12 = arith.constant 0 : index
    %c0_13 = arith.constant 0 : index
    %18 = vector.load %arg6[%c0_12, %c0_13] : memref<512x512xbf16, #tpu.memory_space<vmem>>, vector<512x512xbf16>
    %cst_14 = arith.constant dense<0.000000e+00> : vector<8x512xf32>
    %19 = tpu.matmul %17, %18, %cst_14 {dimension_numbers = #tpu.dot_dimension_numbers<[1], [0], [0], [1], [0, 0, 1, 1], [], []>} : vector<8x512xbf16>, vector<512x512xbf16>, vector<8x512xf32> -> vector<8x512xf32>
    %c0_15 = arith.constant 0 : index
    %c0_16 = arith.constant 0 : index
    %20 = vector.load %arg7[%c0_15, %c0_16] : memref<1x512xf32, #tpu.memory_space<vmem>>, vector<1x512xf32>
    %21 = vector.broadcast %20 : vector<1x512xf32> to vector<8x512xf32>
    %22 = arith.addf %19, %21 : vector<8x512xf32>
    %cst_17 = arith.constant dense<0xFF800000> : vector<8xf32>
    %23 = vector.multi_reduction <maximumf>, %22, %cst_17 [1] : vector<8x512xf32> to vector<8xf32>
    %24 = vector.shape_cast %23 : vector<8xf32> to vector<8x1xf32>
    %25 = vector.broadcast %24 : vector<8x1xf32> to vector<8x512xf32>
    %26 = arith.subf %22, %25 : vector<8x512xf32>
    %27 = math.exp %26 : vector<8x512xf32>
    %28 = arith.truncf %27 : vector<8x512xf32> to vector<8x512xbf16>
    %c0_18 = arith.constant 0 : index
    %c0_19 = arith.constant 0 : index
    %29 = vector.load %arg8[%c0_18, %c0_19] : memref<512x8xbf16, #tpu.memory_space<vmem>>, vector<512x8xbf16>
    %cst_20 = arith.constant dense<0.000000e+00> : vector<8x8xf32>
    %30 = tpu.matmul %28, %29, %cst_20 {dimension_numbers = #tpu.dot_dimension_numbers<[1], [0], [0], [1], [0, 0, 1, 1], [], []>} : vector<8x512xbf16>, vector<512x8xbf16>, vector<8x8xf32> -> vector<8x8xf32>
    %cst_21 = arith.constant 1.000000e-30 : f32
    %31 = vector.broadcast %cst_21 : f32 to vector<8x8xf32>
    %32 = arith.maximumf %30, %31 : vector<8x8xf32>
    %33 = tpu.reciprocal %32 {approx = true} : vector<8x8xf32> -> vector<8x8xf32>
    %34 = arith.mulf %32, %33 : vector<8x8xf32>
    %cst_22 = arith.constant 2.000000e+00 : f32
    %35 = vector.broadcast %cst_22 : f32 to vector<8x8xf32>
    %36 = arith.subf %35, %34 : vector<8x8xf32>
    %37 = arith.mulf %33, %36 : vector<8x8xf32>
    %c0_23 = arith.constant 0 : index
    %c0_24 = arith.constant 0 : index
    %38 = vector.load %arg9[%c0_23, %c0_24] : memref<8x512xf32, #tpu.memory_space<vmem>>, vector<8x512xf32>
    %cst_25 = arith.constant dense<0.000000e+00> : vector<8x512xf32>
    %39 = tpu.matmul %37, %38, %cst_25 {dimension_numbers = #tpu.dot_dimension_numbers<[1], [0], [0], [1], [0, 0, 1, 1], [], []>} : vector<8x8xf32>, vector<8x512xf32>, vector<8x512xf32> -> vector<8x512xf32>
    %40 = arith.mulf %27, %39 : vector<8x512xf32>
    %c0_26 = arith.constant 0 : index
    %c0_27 = arith.constant 0 : index
    %41 = vector.load %arg10[%c0_26, %c0_27] : memref<8x512xf32, #tpu.memory_space<vmem>>, vector<8x512xf32>
    tpu.vector_store %arg10[%c0_26, %c0_27], %40 {strides = array<i32>} : memref<8x512xf32, #tpu.memory_space<vmem>>, vector<8x512xf32>,
    return
  }
  func.func @transform_0(%arg0: i32) -> (i32, i32) {
    %c0_i32 = arith.constant 0 : i32
    %c0_i32_0 = arith.constant 0 : i32
    return %arg0, %c0_i32 : i32, i32
  }
  func.func @transform_1(%arg0: i32) -> (i32, i32) {
    %c0_i32 = arith.constant 0 : i32
    %c0_i32_0 = arith.constant 0 : i32
    %c0_i32_1 = arith.constant 0 : i32
    return %c0_i32, %c0_i32_0 : i32, i32
  }
  func.func @transform_2(%arg0: i32) -> (i32, i32) {
    %c0_i32 = arith.constant 0 : i32
    %c0_i32_0 = arith.constant 0 : i32
    %c0_i32_1 = arith.constant 0 : i32
    return %c0_i32, %c0_i32_0 : i32, i32
  }
  func.func @transform_3(%arg0: i32) -> (i32, i32) {
    %c0_i32 = arith.constant 0 : i32
    %c0_i32_0 = arith.constant 0 : i32
    %c0_i32_1 = arith.constant 0 : i32
    return %c0_i32, %c0_i32_0 : i32, i32
  }
  func.func @transform_4(%arg0: i32) -> (i32, i32) {
    %c0_i32 = arith.constant 0 : i32
    %c0_i32_0 = arith.constant 0 : i32
    %c0_i32_1 = arith.constant 0 : i32
    return %c0_i32, %c0_i32_0 : i32, i32
  }
  func.func @transform_5(%arg0: i32) -> (i32, i32) {
    %c0_i32 = arith.constant 0 : i32
    %c0_i32_0 = arith.constant 0 : i32
    %c0_i32_1 = arith.constant 0 : i32
    return %c0_i32, %c0_i32_0 : i32, i32
  }
  func.func @transform_6(%arg0: i32) -> (i32, i32) {
    %c0_i32 = arith.constant 0 : i32
    %c0_i32_0 = arith.constant 0 : i32
    %c0_i32_1 = arith.constant 0 : i32
    return %c0_i32, %c0_i32_0 : i32, i32
  }
  func.func @transform_7(%arg0: i32) -> (i32, i32) {
    %c0_i32 = arith.constant 0 : i32
    %c0_i32_0 = arith.constant 0 : i32
    %c0_i32_1 = arith.constant 0 : i32
    return %c0_i32, %c0_i32_0 : i32, i32
  }
  func.func @transform_8(%arg0: i32) -> (i32, i32) {
    %c0_i32 = arith.constant 0 : i32
    %c0_i32_0 = arith.constant 0 : i32
    %c0_i32_1 = arith.constant 0 : i32
    return %c0_i32, %c0_i32_0 : i32, i32
  }
  func.func @transform_9(%arg0: i32) -> (i32, i32) {
    %c0_i32 = arith.constant 0 : i32
    %c0_i32_0 = arith.constant 0 : i32
    return %arg0, %c0_i32 : i32, i32
  }
}

</mosaic_0001>

<bundles_post_ra>
// kernel: tpu_custom_call.1
= control target key start
LH: loop header
LB: loop body
LE: loop exit
PB: predicated region body
PF: predicated region fallthrough
CT: control target
= control target key end

     0   :  { %14 = vsyncpa [#allocation3], 0  ;;  %s6448_s0 = inlined_call_operand.hbm [shape: f32[8,1024], index: 0, kind: input, shape index: {}]   ;;  %s6449_s1 = inlined_call_operand.hbm [shape: bf16[1024,512], index: 1, kind: input, shape index: {}]   ;;  %s6450_s2 = inlined_call_operand.hbm [shape: f32[1,512], index: 2, kind: input, shape index: {}]   ;;  %s6451_s3 = inlined_call_operand.hbm [shape: bf16[512,512], index: 3, kind: input, shape index: {}]   ;;  %s6452_s4 = inlined_call_operand.hbm [shape: f32[1,512], index: 4, kind: input, shape index: {}]   ;;  %s6453_s5 = inlined_call_operand.hbm [shape: bf16[512,512], index: 5, kind: input, shape index: {}]   ;;  %s6454_s6 = inlined_call_operand.hbm [shape: f32[1,512], index: 6, kind: input, shape index: {}]   ;;  %s6455_s7 = inlined_call_operand.hbm [shape: bf16[512,8], index: 7, kind: input, shape index: {}]   ;;  %s6456_s8 = inlined_call_operand.hbm [shape: f32[8,512], index: 8, kind: input, shape index: {}]   ;;  %s6457_s9 = inlined_call_operand.hbm [shape: f32[8,512], index: 9, kind: output, shape index: {}]  }
   0x1   :  { %15 = vsyncpa [#allocation6], 0 }
   0x2   :  { %16 = vsyncpa [#allocation9], 0 }
   0x3   :  { %17 = vsyncpa [#allocation12], 0 }
   0x4   :  { %18 = vsyncpa [#allocation15], 0 }
   0x5   :  { %19 = vsyncpa [#allocation4], 0  ;;  %s6210_s30 = smov [#allocation5]   ;;  %s5978_s13 = scalar_lea.hbm %s6449_s1, 32768 }
   0x6   :  { %s35_s10 = sshll.u32 %s6210_s30, 4  ;;  %p5979_p0 = scmp.ne.s32.totalorder %s6449_s1, %s5978_s13  ;;  %s36_s10 = int_to_ptr.vmem [resolvable:$true] %s35_s10 }
   0x7   :  { %p5982_p1 = scmp.lt.u32.totalorder %s5978_s13, %s6449_s1 }
   0x9   :  { %p5984_p2 = pnand %p5982_p1, %p5979_p0 }
   0xb   :  { %5987 = shalt.err (!%p5984_p2)
}
   0xc   :  { %s5988_s18 = scalar_lea.vmem %s36_s10, 32768  ;;  %p5993_p4 = scmp.lt.s32.totalorder %s36_s10, %s36_s10 }
   0xd   :  { %p5989_p3 = scmp.ne.s32.totalorder %s36_s10, %s5988_s18  ;;  %p5994_p5 = scmp.lt.s32.totalorder %s5988_s18, %s5988_s18 }
   0xf   :  { %p5995_p6 = por %p5994_p5, %p5993_p4 }
  0x11   :  { %p5996_p7 = pnand %p5995_p6, %p5989_p3 }
  0x13   :  { %5999 = shalt.err (!%p5996_p7)
}
  0x14   :  { %s6211_s19 = smov 256   ;;  %s6212_s20 = smov 16  }
  0x15   :  { %41 = dma.hbm_to_vmem [thread:$0]  %s6449_s1, 32768, %s36_s10, [#allocation6], %s6211_s19, %s6211_s19, %s6212_s20  }
  0x16   :  { %s6213_s23 = smov [#allocation8]   ;;  %s6214_s25 = smov [#allocation11]  }
  0x17   :  { %s57_s24 = sshll.u32 %s6213_s23, 4  ;;  %s79_s26 = sshll.u32 %s6214_s25, 4  ;;  %s58_s24 = int_to_ptr.vmem [resolvable:$true] %s57_s24  ;;  %s80_s26 = int_to_ptr.vmem [resolvable:$true] %s79_s26 }
  0x18   :  { %s6000_s29 = scalar_lea.hbm %s6451_s3, 16384 }
  0x19   :  { %p6001_p8 = scmp.ne.s32.totalorder %s6451_s3, %s6000_s29  ;;  %p6004_p9 = scmp.lt.u32.totalorder %s6000_s29, %s6451_s3 }
  0x1b   :  { %p6006_p10 = pnand %p6004_p9, %p6001_p8 }
  0x1d   :  { %6009 = shalt.err (!%p6006_p10)
}
  0x1e   :  { %s6010_s1 = scalar_lea.vmem %s58_s24, 16384  ;;  %p6015_p12 = scmp.lt.s32.totalorder %s58_s24, %s58_s24 }
  0x1f   :  { %p6011_p11 = scmp.ne.s32.totalorder %s58_s24, %s6010_s1  ;;  %p6016_p13 = scmp.lt.s32.totalorder %s6010_s1, %s6010_s1 }
  0x21   :  { %p6017_p0 = por %p6016_p13, %p6015_p12 }
  0x23   :  { %p6018_p1 = pnand %p6017_p0, %p6011_p11 }
  0x25   :  { %6021 = shalt.err (!%p6018_p1)
}
  0x26   :  { %63 = dma.hbm_to_vmem [thread:$0]  %s6451_s3, 16384, %s58_s24, [#allocation9], %s6211_s19, %s6211_s19, %s6212_s20  }
  0x27   :  { %s6022_s17 = scalar_lea.hbm %s6453_s5, 16384 }
  0x28   :  { %p6023_p2 = scmp.ne.s32.totalorder %s6453_s5, %s6022_s17  ;;  %p6026_p3 = scmp.lt.u32.totalorder %s6022_s17, %s6453_s5 }
  0x2a   :  { %p6028_p4 = pnand %p6026_p3, %p6023_p2 }
  0x2c   :  { %6031 = shalt.err (!%p6028_p4)
}
  0x2d   :  { %s6032_s25 = scalar_lea.vmem %s80_s26, 16384  ;;  %p6037_p6 = scmp.lt.s32.totalorder %s80_s26, %s80_s26 }
  0x2e   :  { %p6033_p5 = scmp.ne.s32.totalorder %s80_s26, %s6032_s25  ;;  %p6038_p7 = scmp.lt.s32.totalorder %s6032_s25, %s6032_s25 }
  0x30   :  { %p6039_p8 = por %p6038_p7, %p6037_p6 }
  0x32   :  { %p6040_p9 = pnand %p6039_p8, %p6033_p5 }
  0x34   :  { %6043 = shalt.err (!%p6040_p9)
}
  0x35   :  { %85 = dma.hbm_to_vmem [thread:$0]  %s6453_s5, 16384, %s80_s26, [#allocation12], %s6211_s19, %s6211_s19, %s6212_s20  }
  0x36   :  { %s6215_s27 = smov [#allocation14]   ;;  %s6044_s11 = scalar_lea.hbm %s6455_s7, 4096 }
  0x37   :  { %s101_s28 = sshll.u32 %s6215_s27, 4  ;;  %p6045_p10 = scmp.ne.s32.totalorder %s6455_s7, %s6044_s11  ;;  %s102_s28 = int_to_ptr.vmem [resolvable:$true] %s101_s28 }
  0x38   :  { %p6048_p11 = scmp.lt.u32.totalorder %s6044_s11, %s6455_s7 }
  0x3a   :  { %p6050_p12 = pnand %p6048_p11, %p6045_p10 }
  0x3c   :  { %6053 = shalt.err (!%p6050_p12)
}
  0x3d   :  { %s6054_s14 = scalar_lea.vmem %s102_s28, 4096  ;;  %p6059_p0 = scmp.lt.s32.totalorder %s102_s28, %s102_s28 }
  0x3e   :  { %p6055_p13 = scmp.ne.s32.totalorder %s102_s28, %s6054_s14  ;;  %p6060_p1 = scmp.lt.s32.totalorder %s6054_s14, %s6054_s14 }
  0x40   :  { %p6061_p2 = por %p6060_p1, %p6059_p0 }
  0x42   :  { %p6062_p3 = pnand %p6061_p2, %p6055_p13 }
  0x44   :  { %6065 = shalt.err (!%p6062_p3)
}
  0x45   :  { %s6216_s5 = smov 64   ;;  %s6217_s19 = smov 4  }
  0x46   :  { %107 = dma.hbm_to_vmem [thread:$0]  %s6455_s7, 4096, %s102_s28, [#allocation15], %s6216_s5, %s6216_s5, %s6217_s19  }
  0x47   :  { %s6218_s15 = smov [#allocation2]   ;;  %s6219_s17 = smov [#allocation7]  }
  0x48   :  { %s26_s16 = sshll.u32 %s6218_s15, 4  ;;  %s48_s18 = sshll.u32 %s6219_s17, 4  ;;  %s27_s16 = int_to_ptr.vmem [resolvable:$true] %s26_s16  ;;  %s49_s18 = int_to_ptr.vmem [resolvable:$true] %s48_s18 }
  0x49   :  { %s6066_s23 = scalar_lea.hbm %s6448_s0, 1024 }
  0x4a   :  { %p6067_p4 = scmp.ne.s32.totalorder %s6448_s0, %s6066_s23  ;;  %p6070_p5 = scmp.lt.u32.totalorder %s6066_s23, %s6448_s0 }
  0x4c   :  { %p6072_p6 = pnand %p6070_p5, %p6067_p4 }
  0x4e   :  { %6075 = shalt.err (!%p6072_p6)
}
  0x4f   :  { %s6076_s7 = scalar_lea.vmem %s27_s16, 1024  ;;  %p6081_p8 = scmp.lt.s32.totalorder %s27_s16, %s27_s16 }
  0x50   :  { %p6077_p7 = scmp.ne.s32.totalorder %s27_s16, %s6076_s7  ;;  %p6082_p9 = scmp.lt.s32.totalorder %s6076_s7, %s6076_s7 }
  0x52   :  { %p6083_p10 = por %p6082_p9, %p6081_p8 }
  0x54   :  { %p6084_p11 = pnand %p6083_p10, %p6077_p7 }
  0x56   :  { %6087 = shalt.err (!%p6084_p11)
}
  0x57   :  { %29 = dma.hbm_to_vmem [thread:$0]  %s6448_s0, 1024, %s27_s16, [#allocation3]  }
  0x58   :  { %s6088_s12 = scalar_lea.hbm %s6450_s2, 64 }
  0x59   :  { %p6089_p12 = scmp.ne.s32.totalorder %s6450_s2, %s6088_s12  ;;  %p6092_p13 = scmp.lt.u32.totalorder %s6088_s12, %s6450_s2 }
  0x5b   :  { %p6094_p0 = pnand %p6092_p13, %p6089_p12 }
  0x5d   :  { %6097 = shalt.err (!%p6094_p0)
}
  0x5e   :  { %s6098_s5 = scalar_lea.vmem %s49_s18, 64  ;;  %p6103_p2 = scmp.lt.s32.totalorder %s49_s18, %s49_s18 }
  0x5f   :  { %p6099_p1 = scmp.ne.s32.totalorder %s49_s18, %s6098_s5  ;;  %p6104_p3 = scmp.lt.s32.totalorder %s6098_s5, %s6098_s5 }
  0x61   :  { %p6105_p4 = por %p6104_p3, %p6103_p2 }
  0x63   :  { %p6106_p5 = pnand %p6105_p4, %p6099_p1 }
  0x65   :  { %6109 = shalt.err (!%p6106_p5)
}
  0x66   :  { %51 = dma.hbm_to_vmem [thread:$0]  %s6450_s2, 64, %s49_s18, [#allocation6]  }
  0x67   :  { %s6220_s20 = smov [#allocation10]   ;;  %s6221_s15 = smov [#allocation13]  }
  0x68   :  { %s70_s26 = sshll.u32 %s6220_s20, 4  ;;  %s92_s16 = sshll.u32 %s6221_s15, 4  ;;  %s71_s26 = int_to_ptr.vmem [resolvable:$true] %s70_s26  ;;  %s93_s16 = int_to_ptr.vmem [resolvable:$true] %s92_s16 }
  0x69   :  { %s6110_s22 = scalar_lea.hbm %s6452_s4, 64 }
  0x6a   :  { %p6111_p6 = scmp.ne.s32.totalorder %s6452_s4, %s6110_s22  ;;  %p6114_p7 = scmp.lt.u32.totalorder %s6110_s22, %s6452_s4 }
  0x6c   :  { %p6116_p8 = pnand %p6114_p7, %p6111_p6 }
  0x6e   :  { %6119 = shalt.err (!%p6116_p8)
}
  0x6f   :  { %s6120_s2 = scalar_lea.vmem %s71_s26, 64  ;;  %p6125_p10 = scmp.lt.s32.totalorder %s71_s26, %s71_s26 }
  0x70   :  { %p6121_p9 = scmp.ne.s32.totalorder %s71_s26, %s6120_s2  ;;  %p6126_p11 = scmp.lt.s32.totalorder %s6120_s2, %s6120_s2 }
  0x72   :  { %p6127_p12 = por %p6126_p11, %p6125_p10 }
  0x74   :  { %p6128_p13 = pnand %p6127_p12, %p6121_p9 }
  0x76   :  { %6131 = shalt.err (!%p6128_p13)
}
  0x77   :  { %73 = dma.hbm_to_vmem [thread:$0]  %s6452_s4, 64, %s71_s26, [#allocation9]  }
  0x78   :  { %s6132_s29 = scalar_lea.hbm %s6454_s6, 64 }
  0x79   :  { %p6133_p0 = scmp.ne.s32.totalorder %s6454_s6, %s6132_s29  ;;  %p6136_p1 = scmp.lt.u32.totalorder %s6132_s29, %s6454_s6 }
  0x7b   :  { %p6138_p2 = pnand %p6136_p1, %p6133_p0 }
  0x7d   :  { %6141 = shalt.err (!%p6138_p2)
}
  0x7e   :  { %s6142_s1 = scalar_lea.vmem %s93_s16, 64  ;;  %p6147_p4 = scmp.lt.s32.totalorder %s93_s16, %s93_s16 }
  0x7f   :  { %p6143_p3 = scmp.ne.s32.totalorder %s93_s16, %s6142_s1  ;;  %p6148_p5 = scmp.lt.s32.totalorder %s6142_s1, %s6142_s1 }
  0x81   :  { %p6149_p6 = por %p6148_p5, %p6147_p4 }
  0x83   :  { %p6150_p7 = pnand %p6149_p6, %p6143_p3 }
  0x85   :  { %6153 = shalt.err (!%p6150_p7)
}
  0x86   :  { %95 = dma.hbm_to_vmem [thread:$0]  %s6454_s6, 64, %s93_s16, [#allocation12]  }
  0x87   :  { %s6222_s14 = smov [#allocation16]   ;;  %s6154_s20 = scalar_lea.hbm %s6456_s8, 512 }
  0x88   :  { %s114_s5 = sshll.u32 %s6222_s14, 4  ;;  %p6155_p8 = scmp.ne.s32.totalorder %s6456_s8, %s6154_s20  ;;  %s115_s5 = int_to_ptr.vmem [resolvable:$true] %s114_s5 }
  0x89   :  { %p6158_p9 = scmp.lt.u32.totalorder %s6154_s20, %s6456_s8 }
  0x8b   :  { %p6160_p10 = pnand %p6158_p9, %p6155_p8 }
  0x8d   :  { %6163 = shalt.err (!%p6160_p10)
}
  0x8e   :  { %s6164_s22 = scalar_lea.vmem %s115_s5, 512  ;;  %p6169_p12 = scmp.lt.s32.totalorder %s115_s5, %s115_s5 }
  0x8f   :  { %p6165_p11 = scmp.ne.s32.totalorder %s115_s5, %s6164_s22  ;;  %p6170_p13 = scmp.lt.s32.totalorder %s6164_s22, %s6164_s22 }
  0x91   :  { %p6171_p0 = por %p6170_p13, %p6169_p12 }
  0x93   :  { %p6172_p1 = pnand %p6171_p0, %p6165_p11 }
  0x95   :  { %6175 = shalt.err (!%p6172_p1)
}
  0x96   :  { %117 = dma.hbm_to_vmem [thread:$0]  %s6456_s8, 512, %s115_s5, [#allocation15]  }
  0x97   :  { %6198 = dma.done.wait [#allocation3], 1024  }
  0x98   :  { %6199 = vsyncadd [#allocation3], 4294966272 }
  0x99   :  { %6200 = dma.done.wait [#allocation6], 32832  }
  0x9a   :  { %6201 = vsyncadd [#allocation6], 4294934464 }
  0x9b   :  { %6202 = dma.done.wait [#allocation9], 16448  }
  0x9c   :  { %6203 = vsyncadd [#allocation9], 4294950848 }
  0x9d   :  { %6204 = dma.done.wait [#allocation12], 16448  }
  0x9e   :  { %6205 = vsyncadd [#allocation12], 4294950848 }
  0x9f   :  { %6206 = dma.done.wait [#allocation15], 4608  }
  0xa0   :  { %6207 = vsyncadd [#allocation15], 4294962688  ;;  %v5168_v0 = vld [vmem:[#allocation5 + $0x4] ss:$16 sps:$4 sm:$0xff]   ;;  %v5170_v1 = vld [vmem:[#allocation5 + $0xc] ss:$16 sps:$4 sm:$0xff]  }
  0xa1   :  { %1720 = vmatprep.subr.bf16.mxu0 %v5168_v0  ;;  %v5172_v2 = vld [vmem:[#allocation5] ss:$16 sps:$4 sm:$0xff]   ;;  %v5173_v3 = vld [vmem:[#allocation5 + $0x8] ss:$16 sps:$4 sm:$0xff]   ;;  %1884 = vmatprep.subr.bf16.mxu1 %v5170_v1  ;;  %v5174_v4 = vld [vmem:[#allocation5 + $0x24] ss:$16 sps:$4 sm:$0xff]  }
  0xa2   :  { %1721 = vmatpush1.bf16.msra.mxu0 %v5172_v2  ;;  %1885 = vmatpush1.bf16.msra.mxu1 %v5173_v3  ;;  %v5176_v5 = vld [vmem:[#allocation5 + $0x2c] ss:$16 sps:$4 sm:$0xff]   ;;  %v5178_v6 = vld [vmem:[#allocation5 + $0x20] ss:$16 sps:$4 sm:$0xff]   ;;  %v5179_v7 = vld [vmem:[#allocation5 + $0x28] ss:$16 sps:$4 sm:$0xff]  }
  0xa3   :  { %1722 = vmatprep.subr.bf16.mxu0 %v5174_v4  ;;  %1886 = vmatprep.subr.bf16.mxu1 %v5176_v5  ;;  %v5180_v8 = vld [vmem:[#allocation5 + $0x44] ss:$16 sps:$4 sm:$0xff]   ;;  %v5182_v9 = vld [vmem:[#allocation5 + $0x4c] ss:$16 sps:$4 sm:$0xff]   ;;  %v5184_v10 = vld [vmem:[#allocation5 + $0x40] ss:$16 sps:$4 sm:$0xff]  }
  0xa4   :  { %v5185_v11 = vld [vmem:[#allocation5 + $0x48] ss:$16 sps:$4 sm:$0xff]   ;;  %v5186_v12 = vld [vmem:[#allocation5 + $0x64] ss:$16 sps:$4 sm:$0xff]   ;;  %v5188_v13 = vld [vmem:[#allocation5 + $0x6c] ss:$16 sps:$4 sm:$0xff]  }
  0xa5   :  { %v5190_v14 = vld [vmem:[#allocation5 + $0x60] ss:$16 sps:$4 sm:$0xff]   ;;  %v5191_v15 = vld [vmem:[#allocation5 + $0x68] ss:$16 sps:$4 sm:$0xff]   ;;  %v5192_v16 = vld [vmem:[#allocation5 + $0x84] ss:$16 sps:$4 sm:$0xff]  }
  0xa6   :  { %1723 = vmatpush1.bf16.msra.mxu0 %v5178_v6  ;;  %1887 = vmatpush1.bf16.msra.mxu1 %v5179_v7  ;;  %v5194_v17 = vld [vmem:[#allocation5 + $0x8c] ss:$16 sps:$4 sm:$0xff]   ;;  %v5196_v18 = vld [vmem:[#allocation5 + $0x80] ss:$16 sps:$4 sm:$0xff]   ;;  %v5197_v19 = vld [vmem:[#allocation5 + $0x88] ss:$16 sps:$4 sm:$0xff]  }
  0xa7   :  { %1724 = vmatprep.subr.bf16.mxu0 %v5180_v8  ;;  %1888 = vmatprep.subr.bf16.mxu1 %v5182_v9  ;;  %v5198_v20 = vld [vmem:[#allocation5 + $0xa4] ss:$16 sps:$4 sm:$0xff]   ;;  %v5200_v21 = vld [vmem:[#allocation5 + $0xac] ss:$16 sps:$4 sm:$0xff]   ;;  %v5202_v22 = vld [vmem:[#allocation5 + $0xa0] ss:$16 sps:$4 sm:$0xff]  }
  0xa8   :  { %v5203_v23 = vld [vmem:[#allocation5 + $0xa8] ss:$16 sps:$4 sm:$0xff]   ;;  %v5204_v24 = vld [vmem:[#allocation5 + $0xc4] ss:$16 sps:$4 sm:$0xff]   ;;  %v5206_v25 = vld [vmem:[#allocation5 + $0xcc] ss:$16 sps:$4 sm:$0xff]  }
  0xa9   :  { %v5208_v26 = vld [vmem:[#allocation5 + $0xc0] ss:$16 sps:$4 sm:$0xff]   ;;  %v5209_v27 = vld [vmem:[#allocation5 + $0xc8] ss:$16 sps:$4 sm:$0xff]   ;;  %v5210_v28 = vld [vmem:[#allocation5 + $0xe4] ss:$16 sps:$4 sm:$0xff]  }
  0xaa   :  { %1725 = vmatpush1.bf16.msra.mxu0 %v5184_v10  ;;  %1889 = vmatpush1.bf16.msra.mxu1 %v5185_v11  ;;  %v5212_v29 = vld [vmem:[#allocation5 + $0xec] ss:$16 sps:$4 sm:$0xff]   ;;  %v5214_v30 = vld [vmem:[#allocation5 + $0xe0] ss:$16 sps:$4 sm:$0xff]   ;;  %v5215_v31 = vld [vmem:[#allocation5 + $0xe8] ss:$16 sps:$4 sm:$0xff]  }
  0xab   :  { %1726 = vmatprep.subr.bf16.mxu0 %v5186_v12  ;;  %1890 = vmatprep.subr.bf16.mxu1 %v5188_v13  ;;  %v5216_v32 = vld [vmem:[#allocation5 + $0x104] ss:$16 sps:$4 sm:$0xff]   ;;  %v5218_v33 = vld [vmem:[#allocation5 + $0x10c] ss:$16 sps:$4 sm:$0xff]   ;;  %v5220_v34 = vld [vmem:[#allocation5 + $0x100] ss:$16 sps:$4 sm:$0xff]  }
  0xac   :  { %v5221_v35 = vld [vmem:[#allocation5 + $0x108] ss:$16 sps:$4 sm:$0xff]   ;;  %v5222_v36 = vld [vmem:[#allocation5 + $0x124] ss:$16 sps:$4 sm:$0xff]   ;;  %v5224_v37 = vld [vmem:[#allocation5 + $0x12c] ss:$16 sps:$4 sm:$0xff]  }
  0xad   :  { %v5226_v38 = vld [vmem:[#allocation5 + $0x120] ss:$16 sps:$4 sm:$0xff]   ;;  %v5227_v39 = vld [vmem:[#allocation5 + $0x128] ss:$16 sps:$4 sm:$0xff]   ;;  %v5228_v40 = vld [vmem:[#allocation5 + $0x144] ss:$16 sps:$4 sm:$0xff]  }
  0xae   :  { %1727 = vmatpush1.bf16.msra.mxu0 %v5190_v14  ;;  %1891 = vmatpush1.bf16.msra.mxu1 %v5191_v15  ;;  %v5230_v41 = vld [vmem:[#allocation5 + $0x14c] ss:$16 sps:$4 sm:$0xff]   ;;  %v5232_v42 = vld [vmem:[#allocation5 + $0x140] ss:$16 sps:$4 sm:$0xff]   ;;  %v5233_v43 = vld [vmem:[#allocation5 + $0x148] ss:$16 sps:$4 sm:$0xff]  }
  0xaf   :  { %1728 = vmatprep.subr.bf16.mxu0 %v5192_v16  ;;  %1892 = vmatprep.subr.bf16.mxu1 %v5194_v17  ;;  %v5234_v44 = vld [vmem:[#allocation5 + $0x164] ss:$16 sps:$4 sm:$0xff]   ;;  %v5236_v45 = vld [vmem:[#allocation5 + $0x16c] ss:$16 sps:$4 sm:$0xff]   ;;  %v5238_v47 = vld [vmem:[#allocation5 + $0x160] ss:$16 sps:$4 sm:$0xff]  }
  0xb0   :  { %v147_v46 = vld [vmem:[#allocation2 + $0x8] sm:$0xff]  ;;  %v5240_v50 = vld [vmem:[#allocation5 + $0x184] ss:$16 sps:$4 sm:$0xff]   ;;  %v5244_v52 = vld [vmem:[#allocation5 + $0x180] ss:$16 sps:$4 sm:$0xff]   ;;  %vm4338_vm0 = vcmask 64512  }
  0xb1   :  { %v155_v48 = vpack.c.bf16 %v147_v46, %v147_v46  ;;  %v5239_v49 = vld [vmem:[#allocation5 + $0x168] ss:$16 sps:$4 sm:$0xff]   ;;  %v5242_v51 = vld [vmem:[#allocation5 + $0x18c] ss:$16 sps:$4 sm:$0xff]   ;;  %v5246_v54 = vld [vmem:[#allocation5 + $0x1a4] ss:$16 sps:$4 sm:$0xff]  }
  0xb2   :  { %1729 = vmatpush1.bf16.msra.mxu0 %v5196_v18  ;;  %1893 = vmatpush1.bf16.msra.mxu1 %v5197_v19  ;;  %v5245_v53 = vld [vmem:[#allocation5 + $0x188] ss:$16 sps:$4 sm:$0xff]   ;;  %v5248_v55 = vld [vmem:[#allocation5 + $0x1ac] ss:$16 sps:$4 sm:$0xff]   ;;  %v5250_v56 = vld [vmem:[#allocation5 + $0x1a0] ss:$16 sps:$4 sm:$0xff]  }
  0xb3   :  { %1730 = vmatprep.subr.bf16.mxu0 %v5198_v20  ;;  %1894 = vmatprep.subr.bf16.mxu1 %v5200_v21  ;;  %v5251_v57 = vld [vmem:[#allocation5 + $0x1a8] ss:$16 sps:$4 sm:$0xff]   ;;  %v5252_v58 = vld [vmem:[#allocation5 + $0x1c4] ss:$16 sps:$4 sm:$0xff]   ;;  %v5254_v59 = vld [vmem:[#allocation5 + $0x1cc] ss:$16 sps:$4 sm:$0xff]  }
  0xb4   :  { %1752 = vmatprep.mubr.bf16.mxu0 %v155_v48  ;;  %1916 = vmatprep.mubr.bf16.mxu1 %v155_v48  ;;  %v5256_v60 = vld [vmem:[#allocation5 + $0x1c0] ss:$16 sps:$4 sm:$0xff]   ;;  %v5257_v61 = vld [vmem:[#allocation5 + $0x1c8] ss:$16 sps:$4 sm:$0xff]   ;;  %v5258_v62 = vld [vmem:[#allocation5 + $0x1e4] ss:$16 sps:$4 sm:$0xff]  }
  0xb5   :  { %v5260_v63 = vld [vmem:[#allocation5 + $0x1ec] ss:$16 sps:$4 sm:$0xff]   ;;  %v5262_v0 = vld [vmem:[#allocation5 + $0x1e0] ss:$16 sps:$4 sm:$0xff]   ;;  %v5263_v1 = vld [vmem:[#allocation5 + $0x1e8] ss:$16 sps:$4 sm:$0xff]  }
  0xb6   :  { %1731 = vmatpush1.bf16.msra.mxu0 %v5202_v22  ;;  %1895 = vmatpush1.bf16.msra.mxu1 %v5203_v23  ;;  %v146_v2 = vld [vmem:[#allocation2] sm:$0xff]  ;;  %v5269_v4 = vld [vmem:[#allocation5 + $0x20c] ss:$16 sps:$4 sm:$0xff]   ;;  %v5267_v7 = vld [vmem:[#allocation5 + $0x208] ss:$16 sps:$4 sm:$0xff]   ;;  %s6224_s8 = smov [#allocation17]  }
  0xb7   :  { %1732 = vmatprep.subr.bf16.mxu0 %v5204_v24  ;;  %1896 = vmatprep.subr.bf16.mxu1 %v5206_v25  ;;  %v5266_v3 = vld [vmem:[#allocation5 + $0x204] ss:$16 sps:$4 sm:$0xff]   ;;  %v154_v5 = vpack.c.bf16 %v146_v2, %v146_v2  ;;  %v5264_v6 = vld [vmem:[#allocation5 + $0x200] ss:$16 sps:$4 sm:$0xff]   ;;  %v5275_v9 = vld [vmem:[#allocation5 + $0x22c] ss:$16 sps:$4 sm:$0xff]  }
  0xb8   :  { %v5272_v8 = vld [vmem:[#allocation5 + $0x224] ss:$16 sps:$4 sm:$0xff]   ;;  %v5270_v10 = vld [vmem:[#allocation5 + $0x220] ss:$16 sps:$4 sm:$0xff]   ;;  %v5273_v11 = vld [vmem:[#allocation5 + $0x228] ss:$16 sps:$4 sm:$0xff]  }
  0xb9   :  { %v5278_v12 = vld [vmem:[#allocation5 + $0x244] ss:$16 sps:$4 sm:$0xff]   ;;  %v5281_v13 = vld [vmem:[#allocation5 + $0x24c] ss:$16 sps:$4 sm:$0xff]   ;;  %v5276_v14 = vld [vmem:[#allocation5 + $0x240] ss:$16 sps:$4 sm:$0xff]  }
  0xba   :  { %1733 = vmatpush1.bf16.msra.mxu0 %v5208_v26  ;;  %1897 = vmatpush1.bf16.msra.mxu1 %v5209_v27  ;;  %v5279_v15 = vld [vmem:[#allocation5 + $0x248] ss:$16 sps:$4 sm:$0xff]   ;;  %v5284_v16 = vld [vmem:[#allocation5 + $0x264] ss:$16 sps:$4 sm:$0xff]   ;;  %v5287_v17 = vld [vmem:[#allocation5 + $0x26c] ss:$16 sps:$4 sm:$0xff]  }
  0xbb   :  { %1734 = vmatprep.subr.bf16.mxu0 %v5210_v28  ;;  %1898 = vmatprep.subr.bf16.mxu1 %v5212_v29  ;;  %v5282_v18 = vld [vmem:[#allocation5 + $0x260] ss:$16 sps:$4 sm:$0xff]   ;;  %v5285_v19 = vld [vmem:[#allocation5 + $0x268] ss:$16 sps:$4 sm:$0xff]   ;;  %v5290_v20 = vld [vmem:[#allocation5 + $0x284] ss:$16 sps:$4 sm:$0xff]  }
  0xbc   :  { %v5293_v21 = vld [vmem:[#allocation5 + $0x28c] ss:$16 sps:$4 sm:$0xff]   ;;  %v5288_v22 = vld [vmem:[#allocation5 + $0x280] ss:$16 sps:$4 sm:$0xff]   ;;  %v5291_v23 = vld [vmem:[#allocation5 + $0x288] ss:$16 sps:$4 sm:$0xff]  }
  0xbd   :  { %v5296_v24 = vld [vmem:[#allocation5 + $0x2a4] ss:$16 sps:$4 sm:$0xff]   ;;  %v5299_v25 = vld [vmem:[#allocation5 + $0x2ac] ss:$16 sps:$4 sm:$0xff]   ;;  %v5294_v26 = vld [vmem:[#allocation5 + $0x2a0] ss:$16 sps:$4 sm:$0xff]  }
  0xbe   :  { %1735 = vmatpush1.bf16.msra.mxu0 %v5214_v30  ;;  %1899 = vmatpush1.bf16.msra.mxu1 %v5215_v31  ;;  %v5297_v27 = vld [vmem:[#allocation5 + $0x2a8] ss:$16 sps:$4 sm:$0xff]   ;;  %v5302_v28 = vld [vmem:[#allocation5 + $0x2c4] ss:$16 sps:$4 sm:$0xff]   ;;  %v5305_v29 = vld [vmem:[#allocation5 + $0x2cc] ss:$16 sps:$4 sm:$0xff]  }
  0xbf   :  { %1736 = vmatprep.subr.bf16.mxu0 %v5216_v32  ;;  %1900 = vmatprep.subr.bf16.mxu1 %v5218_v33  ;;  %v149_v30 = vld [vmem:[#allocation2 + $0x18] sm:$0xff]  ;;  %v5300_v31 = vld [vmem:[#allocation5 + $0x2c0] ss:$16 sps:$4 sm:$0xff]   ;;  %v5326_v46 = vld [vmem:[#allocation5 + $0x344] ss:$16 sps:$4 sm:$0xff]   ;;  %s4498_s23 = sshll.u32 %s6224_s8, 4  ;;  %s4499_s23 = int_to_ptr.vmem [resolvable:$true] %s4498_s23 }
  0xc0   :  { %v157_v32 = vpack.c.bf16 %v149_v30, %v149_v30  ;;  %v5303_v33 = vld [vmem:[#allocation5 + $0x2c8] ss:$16 sps:$4 sm:$0xff]   ;;  %v5324_v48 = vld [vmem:[#allocation5 + $0x340] ss:$16 sps:$4 sm:$0xff]   ;;  %v5356_v2 = vld [vmem:[#allocation5 + $0x3e4] ss:$16 sps:$4 sm:$0xff]   ;;  %p6181_p3 = scmp.lt.s32.totalorder %s4499_s23, %s4499_s23 }
  0xc1   :  { %v5392_v30 = vld [vmem:[#allocation5 + $0x4a4] ss:$16 sps:$4 sm:$0xff]   ;;  %s6176_s25 = scalar_lea.vmem %s4499_s23, 512 }
  0xc2   :  { %1737 = vmatpush1.bf16.msra.mxu0 %v5220_v34  ;;  %1901 = vmatpush1.bf16.msra.mxu1 %v5221_v35  ;;  %v5308_v34 = vld [vmem:[#allocation5 + $0x2e4] ss:$16 sps:$4 sm:$0xff]   ;;  %v5311_v35 = vld [vmem:[#allocation5 + $0x2ec] ss:$16 sps:$4 sm:$0xff]   ;;  %p6177_p2 = scmp.ne.s32.totalorder %s4499_s23, %s6176_s25  ;;  %p6182_p4 = scmp.lt.s32.totalorder %s6176_s25, %s6176_s25 }
  0xc3   :  { %1738 = vmatprep.subr.bf16.mxu0 %v5222_v36  ;;  %1902 = vmatprep.subr.bf16.mxu1 %v5224_v37  ;;  %v5306_v36 = vld [vmem:[#allocation5 + $0x2e0] ss:$16 sps:$4 sm:$0xff]   ;;  %v5309_v37 = vld [vmem:[#allocation5 + $0x2e8] ss:$16 sps:$4 sm:$0xff]  }
  0xc4   :  { %p6183_p5 = por %p6182_p4, %p6181_p3 }
  0xc6   :  { %1739 = vmatpush1.bf16.msra.mxu0 %v5226_v38  ;;  %1903 = vmatpush1.bf16.msra.mxu1 %v5227_v39  ;;  %v5314_v38 = vld [vmem:[#allocation5 + $0x304] ss:$16 sps:$4 sm:$0xff]   ;;  %v5317_v39 = vld [vmem:[#allocation5 + $0x30c] ss:$16 sps:$4 sm:$0xff]   ;;  %p6184_p6 = pnand %p6183_p5, %p6177_p2 }
  0xc7   :  { %1740 = vmatprep.subr.bf16.mxu0 %v5228_v40  ;;  %1904 = vmatprep.subr.bf16.mxu1 %v5230_v41  ;;  %v5312_v40 = vld [vmem:[#allocation5 + $0x300] ss:$16 sps:$4 sm:$0xff]   ;;  %v5315_v41 = vld [vmem:[#allocation5 + $0x308] ss:$16 sps:$4 sm:$0xff]  }
  0xca   :  { %1741 = vmatpush1.bf16.msra.mxu0 %v5232_v42  ;;  %1905 = vmatpush1.bf16.msra.mxu1 %v5233_v43  ;;  %v5320_v42 = vld [vmem:[#allocation5 + $0x324] ss:$16 sps:$4 sm:$0xff]   ;;  %v5323_v43 = vld [vmem:[#allocation5 + $0x32c] ss:$16 sps:$4 sm:$0xff]  }
  0xcb   :  { %1742 = vmatprep.subr.bf16.mxu0 %v5234_v44  ;;  %1906 = vmatprep.subr.bf16.mxu1 %v5236_v45  ;;  %v5318_v44 = vld [vmem:[#allocation5 + $0x320] ss:$16 sps:$4 sm:$0xff]   ;;  %v5321_v45 = vld [vmem:[#allocation5 + $0x328] ss:$16 sps:$4 sm:$0xff]  }
  0xce   :  { %1743 = vmatpush1.bf16.msra.mxu0 %v5238_v47  ;;  %1907 = vmatpush1.bf16.msra.mxu1 %v5239_v49  ;;  %v5329_v47 = vld [vmem:[#allocation5 + $0x34c] ss:$16 sps:$4 sm:$0xff]   ;;  %v5327_v49 = vld [vmem:[#allocation5 + $0x348] ss:$16 sps:$4 sm:$0xff]  }
  0xcf   :  { %1744 = vmatprep.subr.bf16.mxu0 %v5240_v50  ;;  %1908 = vmatprep.subr.bf16.mxu1 %v5242_v51  ;;  %v5332_v50 = vld [vmem:[#allocation5 + $0x364] ss:$16 sps:$4 sm:$0xff]   ;;  %v5335_v51 = vld [vmem:[#allocation5 + $0x36c] ss:$16 sps:$4 sm:$0xff]  }
  0xd2   :  { %1745 = vmatpush1.bf16.msra.mxu0 %v5244_v52  ;;  %1909 = vmatpush1.bf16.msra.mxu1 %v5245_v53  ;;  %v5330_v52 = vld [vmem:[#allocation5 + $0x360] ss:$16 sps:$4 sm:$0xff]   ;;  %v5333_v53 = vld [vmem:[#allocation5 + $0x368] ss:$16 sps:$4 sm:$0xff]  }
  0xd3   :  { %1746 = vmatprep.subr.bf16.mxu0 %v5246_v54  ;;  %1910 = vmatprep.subr.bf16.mxu1 %v5248_v55  ;;  %v5338_v54 = vld [vmem:[#allocation5 + $0x384] ss:$16 sps:$4 sm:$0xff]   ;;  %v5341_v55 = vld [vmem:[#allocation5 + $0x38c] ss:$16 sps:$4 sm:$0xff]  }
  0xd6   :  { %1747 = vmatpush1.bf16.msra.mxu0 %v5250_v56  ;;  %1911 = vmatpush1.bf16.msra.mxu1 %v5251_v57  ;;  %v5336_v56 = vld [vmem:[#allocation5 + $0x380] ss:$16 sps:$4 sm:$0xff]   ;;  %v5339_v57 = vld [vmem:[#allocation5 + $0x388] ss:$16 sps:$4 sm:$0xff]  }
  0xd7   :  { %1748 = vmatprep.subr.bf16.mxu0 %v5252_v58  ;;  %1912 = vmatprep.subr.bf16.mxu1 %v5254_v59  ;;  %v5344_v58 = vld [vmem:[#allocation5 + $0x3a4] ss:$16 sps:$4 sm:$0xff]   ;;  %v5347_v59 = vld [vmem:[#allocation5 + $0x3ac] ss:$16 sps:$4 sm:$0xff]  }
  0xda   :  { %1749 = vmatpush1.bf16.msra.mxu0 %v5256_v60  ;;  %1913 = vmatpush1.bf16.msra.mxu1 %v5257_v61  ;;  %v5342_v60 = vld [vmem:[#allocation5 + $0x3a0] ss:$16 sps:$4 sm:$0xff]   ;;  %v5345_v61 = vld [vmem:[#allocation5 + $0x3a8] ss:$16 sps:$4 sm:$0xff]  }
  0xdb   :  { %1750 = vmatprep.subr.bf16.mxu0 %v5258_v62  ;;  %1914 = vmatprep.subr.bf16.mxu1 %v5260_v63  ;;  %v5350_v62 = vld [vmem:[#allocation5 + $0x3c4] ss:$16 sps:$4 sm:$0xff]   ;;  %v5353_v63 = vld [vmem:[#allocation5 + $0x3cc] ss:$16 sps:$4 sm:$0xff]  }
  0xde   :  { %1751 = vmatpush1.bf16.msra.mxu0 %v5262_v0  ;;  %1915 = vmatpush1.bf16.msra.mxu1 %v5263_v1  ;;  %v5348_v0 = vld [vmem:[#allocation5 + $0x3c0] ss:$16 sps:$4 sm:$0xff]   ;;  %v5351_v1 = vld [vmem:[#allocation5 + $0x3c8] ss:$16 sps:$4 sm:$0xff]  }
  0xdf   :  { %1761 = vmatprep.subr.bf16.mxu0 %v5266_v3  ;;  %1925 = vmatprep.subr.bf16.mxu1 %v5269_v4  ;;  %v5359_v3 = vld [vmem:[#allocation5 + $0x3ec] ss:$16 sps:$4 sm:$0xff]   ;;  %v5354_v4 = vld [vmem:[#allocation5 + $0x3e0] ss:$16 sps:$4 sm:$0xff]  }
  0xe1   :  { %1753 = vmatmul.mubr.bf16.vlgmr.msra.gmra.mrb[0].mxu0 %v154_v5  ;;  %1917 = vmatmul.mubr.bf16.vlgmr.msra.gmra.mrb[0].mxu1 %v154_v5  ;;  %v5357_v5 = vld [vmem:[#allocation5 + $0x3e8] ss:$16 sps:$4 sm:$0xff]  }
  0xe2   :  { %1762 = vmatpush1.bf16.msra.mxu0 %v5264_v6  ;;  %1926 = vmatpush1.bf16.msra.mxu1 %v5267_v7  ;;  %v5362_v6 = vld [vmem:[#allocation5 + $0x404] ss:$16 sps:$4 sm:$0xff]  }
  0xe3   :  { %1763 = vmatprep.subr.bf16.mxu0 %v5272_v8  ;;  %1927 = vmatprep.subr.bf16.mxu1 %v5275_v9  ;;  %v148_v7 = vld [vmem:[#allocation2 + $0x10] sm:$0xff]  ;;  %v5365_v8 = vld [vmem:[#allocation5 + $0x40c] ss:$16 sps:$4 sm:$0xff]  }
  0xe4   :  { %1793 = vmatprep.mubr.bf16.mxu0 %v157_v32  ;;  %1957 = vmatprep.mubr.bf16.mxu1 %v157_v32  ;;  %v5360_v9 = vld [vmem:[#allocation5 + $0x400] ss:$16 sps:$4 sm:$0xff]  }
  0xe5   :  { %v5390_v32 = vld [vmem:[#allocation5 + $0x4a0] ss:$16 sps:$4 sm:$0xff]  }
  0xe6   :  { %1764 = vmatpush1.bf16.msra.mxu0 %v5270_v10  ;;  %1928 = vmatpush1.bf16.msra.mxu1 %v5273_v11  ;;  %v5363_v10 = vld [vmem:[#allocation5 + $0x408] ss:$16 sps:$4 sm:$0xff]   ;;  %v156_v11 = vpack.c.bf16 %v148_v7, %v148_v7  ;;  %v5455_v7 = vld [vmem:[#allocation5 + $0x5ec] ss:$16 sps:$4 sm:$0xff]  }
  0xe7   :  { %1765 = vmatprep.subr.bf16.mxu0 %v5278_v12  ;;  %1929 = vmatprep.subr.bf16.mxu1 %v5281_v13  ;;  %v5368_v12 = vld [vmem:[#allocation5 + $0x424] ss:$16 sps:$4 sm:$0xff]   ;;  %v5371_v13 = vld [vmem:[#allocation5 + $0x42c] ss:$16 sps:$4 sm:$0xff]  }
  0xea   :  { %1766 = vmatpush1.bf16.msra.mxu0 %v5276_v14  ;;  %1930 = vmatpush1.bf16.msra.mxu1 %v5279_v15  ;;  %v151_v14 = vld [vmem:[#allocation2 + $0x28] sm:$0xff] }
  0xeb   :  { %1767 = vmatprep.subr.bf16.mxu0 %v5284_v16  ;;  %1931 = vmatprep.subr.bf16.mxu1 %v5287_v17  ;;  %v159_v15 = vpack.c.bf16 %v151_v14, %v151_v14  ;;  %v5366_v16 = vld [vmem:[#allocation5 + $0x420] ss:$16 sps:$4 sm:$0xff]   ;;  %v5369_v17 = vld [vmem:[#allocation5 + $0x428] ss:$16 sps:$4 sm:$0xff]  }
  0xec   :  { %v5459_v14 = vld [vmem:[#allocation5 + $0x608] ss:$16 sps:$4 sm:$0xff]  }
  0xee   :  { %1768 = vmatpush1.bf16.msra.mxu0 %v5282_v18  ;;  %1932 = vmatpush1.bf16.msra.mxu1 %v5285_v19  ;;  %v5374_v18 = vld [vmem:[#allocation5 + $0x444] ss:$16 sps:$4 sm:$0xff]   ;;  %v5377_v19 = vld [vmem:[#allocation5 + $0x44c] ss:$16 sps:$4 sm:$0xff]  }
  0xef   :  { %1769 = vmatprep.subr.bf16.mxu0 %v5290_v20  ;;  %1933 = vmatprep.subr.bf16.mxu1 %v5293_v21  ;;  %v5372_v20 = vld [vmem:[#allocation5 + $0x440] ss:$16 sps:$4 sm:$0xff]   ;;  %v5375_v21 = vld [vmem:[#allocation5 + $0x448] ss:$16 sps:$4 sm:$0xff]  }
  0xf2   :  { %1770 = vmatpush1.bf16.msra.mxu0 %v5288_v22  ;;  %1934 = vmatpush1.bf16.msra.mxu1 %v5291_v23  ;;  %v5380_v22 = vld [vmem:[#allocation5 + $0x464] ss:$16 sps:$4 sm:$0xff]   ;;  %v5383_v23 = vld [vmem:[#allocation5 + $0x46c] ss:$16 sps:$4 sm:$0xff]  }
  0xf3   :  { %1771 = vmatprep.subr.bf16.mxu0 %v5296_v24  ;;  %1935 = vmatprep.subr.bf16.mxu1 %v5299_v25  ;;  %v5378_v24 = vld [vmem:[#allocation5 + $0x460] ss:$16 sps:$4 sm:$0xff]   ;;  %v5381_v25 = vld [vmem:[#allocation5 + $0x468] ss:$16 sps:$4 sm:$0xff]  }
  0xf6   :  { %1772 = vmatpush1.bf16.msra.mxu0 %v5294_v26  ;;  %1936 = vmatpush1.bf16.msra.mxu1 %v5297_v27  ;;  %v5386_v26 = vld [vmem:[#allocation5 + $0x484] ss:$16 sps:$4 sm:$0xff]   ;;  %v5389_v27 = vld [vmem:[#allocation5 + $0x48c] ss:$16 sps:$4 sm:$0xff]  }
  0xf7   :  { %1773 = vmatprep.subr.bf16.mxu0 %v5302_v28  ;;  %1937 = vmatprep.subr.bf16.mxu1 %v5305_v29  ;;  %v5384_v28 = vld [vmem:[#allocation5 + $0x480] ss:$16 sps:$4 sm:$0xff]   ;;  %v5387_v29 = vld [vmem:[#allocation5 + $0x488] ss:$16 sps:$4 sm:$0xff]  }
  0xfa   :  { %1774 = vmatpush1.bf16.msra.mxu0 %v5300_v31  ;;  %1938 = vmatpush1.bf16.msra.mxu1 %v5303_v33  ;;  %v5395_v31 = vld [vmem:[#allocation5 + $0x4ac] ss:$16 sps:$4 sm:$0xff]   ;;  %v5393_v33 = vld [vmem:[#allocation5 + $0x4a8] ss:$16 sps:$4 sm:$0xff]  }
  0xfb   :  { %1775 = vmatprep.subr.bf16.mxu0 %v5308_v34  ;;  %1939 = vmatprep.subr.bf16.mxu1 %v5311_v35  ;;  %v5398_v34 = vld [vmem:[#allocation5 + $0x4c4] ss:$16 sps:$4 sm:$0xff]   ;;  %v5401_v35 = vld [vmem:[#allocation5 + $0x4cc] ss:$16 sps:$4 sm:$0xff]  }
  0xfe   :  { %1776 = vmatpush1.bf16.msra.mxu0 %v5306_v36  ;;  %1940 = vmatpush1.bf16.msra.mxu1 %v5309_v37  ;;  %v5396_v36 = vld [vmem:[#allocation5 + $0x4c0] ss:$16 sps:$4 sm:$0xff]   ;;  %v5399_v37 = vld [vmem:[#allocation5 + $0x4c8] ss:$16 sps:$4 sm:$0xff]  }
  0xff   :  { %1777 = vmatprep.subr.bf16.mxu0 %v5314_v38  ;;  %1941 = vmatprep.subr.bf16.mxu1 %v5317_v39  ;;  %v5404_v38 = vld [vmem:[#allocation5 + $0x4e4] ss:$16 sps:$4 sm:$0xff]   ;;  %v5407_v39 = vld [vmem:[#allocation5 + $0x4ec] ss:$16 sps:$4 sm:$0xff]  }
 0x102   :  { %1778 = vmatpush1.bf16.msra.mxu0 %v5312_v40  ;;  %1942 = vmatpush1.bf16.msra.mxu1 %v5315_v41  ;;  %v5402_v40 = vld [vmem:[#allocation5 + $0x4e0] ss:$16 sps:$4 sm:$0xff]   ;;  %v5405_v41 = vld [vmem:[#allocation5 + $0x4e8] ss:$16 sps:$4 sm:$0xff]  }
 0x103   :  { %1779 = vmatprep.subr.bf16.mxu0 %v5320_v42  ;;  %1943 = vmatprep.subr.bf16.mxu1 %v5323_v43  ;;  %v5410_v42 = vld [vmem:[#allocation5 + $0x504] ss:$16 sps:$4 sm:$0xff]   ;;  %v5413_v43 = vld [vmem:[#allocation5 + $0x50c] ss:$16 sps:$4 sm:$0xff]  }
 0x106   :  { %1780 = vmatpush1.bf16.msra.mxu0 %v5318_v44  ;;  %1944 = vmatpush1.bf16.msra.mxu1 %v5321_v45  ;;  %v5408_v44 = vld [vmem:[#allocation5 + $0x500] ss:$16 sps:$4 sm:$0xff]   ;;  %v5411_v45 = vld [vmem:[#allocation5 + $0x508] ss:$16 sps:$4 sm:$0xff]  }
 0x107   :  { %1781 = vmatprep.subr.bf16.mxu0 %v5326_v46  ;;  %1945 = vmatprep.subr.bf16.mxu1 %v5329_v47  ;;  %v5416_v46 = vld [vmem:[#allocation5 + $0x524] ss:$16 sps:$4 sm:$0xff]   ;;  %v5419_v47 = vld [vmem:[#allocation5 + $0x52c] ss:$16 sps:$4 sm:$0xff]  }
 0x10a   :  { %1782 = vmatpush1.bf16.msra.mxu0 %v5324_v48  ;;  %1946 = vmatpush1.bf16.msra.mxu1 %v5327_v49  ;;  %v5414_v48 = vld [vmem:[#allocation5 + $0x520] ss:$16 sps:$4 sm:$0xff]   ;;  %v5417_v49 = vld [vmem:[#allocation5 + $0x528] ss:$16 sps:$4 sm:$0xff]  }
 0x10b   :  { %1783 = vmatprep.subr.bf16.mxu0 %v5332_v50  ;;  %1947 = vmatprep.subr.bf16.mxu1 %v5335_v51  ;;  %v5422_v50 = vld [vmem:[#allocation5 + $0x544] ss:$16 sps:$4 sm:$0xff]   ;;  %v5425_v51 = vld [vmem:[#allocation5 + $0x54c] ss:$16 sps:$4 sm:$0xff]  }
 0x10e   :  { %1784 = vmatpush1.bf16.msra.mxu0 %v5330_v52  ;;  %1948 = vmatpush1.bf16.msra.mxu1 %v5333_v53  ;;  %v5420_v52 = vld [vmem:[#allocation5 + $0x540] ss:$16 sps:$4 sm:$0xff]   ;;  %v5423_v53 = vld [vmem:[#allocation5 + $0x548] ss:$16 sps:$4 sm:$0xff]  }
 0x10f   :  { %1785 = vmatprep.subr.bf16.mxu0 %v5338_v54  ;;  %1949 = vmatprep.subr.bf16.mxu1 %v5341_v55  ;;  %v5428_v54 = vld [vmem:[#allocation5 + $0x564] ss:$16 sps:$4 sm:$0xff]   ;;  %v5431_v55 = vld [vmem:[#allocation5 + $0x56c] ss:$16 sps:$4 sm:$0xff]  }
 0x112   :  { %1786 = vmatpush1.bf16.msra.mxu0 %v5336_v56  ;;  %1950 = vmatpush1.bf16.msra.mxu1 %v5339_v57  ;;  %v5426_v56 = vld [vmem:[#allocation5 + $0x560] ss:$16 sps:$4 sm:$0xff]   ;;  %v5429_v57 = vld [vmem:[#allocation5 + $0x568] ss:$16 sps:$4 sm:$0xff]  }
 0x113   :  { %1787 = vmatprep.subr.bf16.mxu0 %v5344_v58  ;;  %1951 = vmatprep.subr.bf16.mxu1 %v5347_v59  ;;  %v5434_v58 = vld [vmem:[#allocation5 + $0x584] ss:$16 sps:$4 sm:$0xff]   ;;  %v5437_v59 = vld [vmem:[#allocation5 + $0x58c] ss:$16 sps:$4 sm:$0xff]  }
 0x116   :  { %1788 = vmatpush1.bf16.msra.mxu0 %v5342_v60  ;;  %1952 = vmatpush1.bf16.msra.mxu1 %v5345_v61  ;;  %v5432_v60 = vld [vmem:[#allocation5 + $0x580] ss:$16 sps:$4 sm:$0xff]   ;;  %v5435_v61 = vld [vmem:[#allocation5 + $0x588] ss:$16 sps:$4 sm:$0xff]  }
 0x117   :  { %1789 = vmatprep.subr.bf16.mxu0 %v5350_v62  ;;  %1953 = vmatprep.subr.bf16.mxu1 %v5353_v63  ;;  %v5440_v62 = vld [vmem:[#allocation5 + $0x5a4] ss:$16 sps:$4 sm:$0xff]   ;;  %v5443_v63 = vld [vmem:[#allocation5 + $0x5ac] ss:$16 sps:$4 sm:$0xff]  }
 0x11a   :  { %1790 = vmatpush1.bf16.msra.mxu0 %v5348_v0  ;;  %1954 = vmatpush1.bf16.msra.mxu1 %v5351_v1  ;;  %v5438_v0 = vld [vmem:[#allocation5 + $0x5a0] ss:$16 sps:$4 sm:$0xff]   ;;  %v5441_v1 = vld [vmem:[#allocation5 + $0x5a8] ss:$16 sps:$4 sm:$0xff]  }
 0x11b   :  { %1791 = vmatprep.subr.bf16.mxu0 %v5356_v2  ;;  %1955 = vmatprep.subr.bf16.mxu1 %v5359_v3  ;;  %v5446_v2 = vld [vmem:[#allocation5 + $0x5c4] ss:$16 sps:$4 sm:$0xff]   ;;  %v5449_v3 = vld [vmem:[#allocation5 + $0x5cc] ss:$16 sps:$4 sm:$0xff]  }
 0x11e   :  { %1792 = vmatpush1.bf16.msra.mxu0 %v5354_v4  ;;  %1956 = vmatpush1.bf16.msra.mxu1 %v5357_v5  ;;  %v5444_v4 = vld [vmem:[#allocation5 + $0x5c0] ss:$16 sps:$4 sm:$0xff]   ;;  %v5447_v5 = vld [vmem:[#allocation5 + $0x5c8] ss:$16 sps:$4 sm:$0xff]  }
 0x11f   :  { %1802 = vmatprep.subr.bf16.mxu0 %v5362_v6  ;;  %1966 = vmatprep.subr.bf16.mxu1 %v5365_v8  ;;  %v5452_v6 = vld [vmem:[#allocation5 + $0x5e4] ss:$16 sps:$4 sm:$0xff]   ;;  %v5450_v8 = vld [vmem:[#allocation5 + $0x5e0] ss:$16 sps:$4 sm:$0xff]  }
 0x121   :  { %1794 = vmatmul.mubr.bf16.vlgmr.msra.gmra.mrb[0].mxu0 %v156_v11  ;;  %1958 = vmatmul.mubr.bf16.vlgmr.msra.gmra.mrb[0].mxu1 %v156_v11  ;;  %v150_v11 = vld [vmem:[#allocation2 + $0x20] sm:$0xff] }
 0x122   :  { %1803 = vmatpush1.bf16.msra.mxu0 %v5360_v9  ;;  %1967 = vmatpush1.bf16.msra.mxu1 %v5363_v10  ;;  %v5453_v9 = vld [vmem:[#allocation5 + $0x5e8] ss:$16 sps:$4 sm:$0xff]   ;;  %v5458_v10 = vld [vmem:[#allocation5 + $0x604] ss:$16 sps:$4 sm:$0xff]  }
 0x123   :  { %1804 = vmatprep.subr.bf16.mxu0 %v5368_v12  ;;  %1968 = vmatprep.subr.bf16.mxu1 %v5371_v13  ;;  %v5461_v12 = vld [vmem:[#allocation5 + $0x60c] ss:$16 sps:$4 sm:$0xff]   ;;  %v5456_v13 = vld [vmem:[#allocation5 + $0x600] ss:$16 sps:$4 sm:$0xff]  }
 0x124   :  { %1834 = vmatprep.mubr.bf16.mxu0 %v159_v15  ;;  %1998 = vmatprep.mubr.bf16.mxu1 %v159_v15  ;;  %v158_v15 = vpack.c.bf16 %v150_v11, %v150_v11  ;;  %v5551_v11 = vld [vmem:[#allocation5 + $0x7ec] ss:$16 sps:$4 sm:$0xff]  }
 0x126   :  { %1805 = vmatpush1.bf16.msra.mxu0 %v5366_v16  ;;  %1969 = vmatpush1.bf16.msra.mxu1 %v5369_v17  ;;  %v153_v16 = vld [vmem:[#allocation2 + $0x38] sm:$0xff]  ;;  %v5464_v17 = vld [vmem:[#allocation5 + $0x624] ss:$16 sps:$4 sm:$0xff]  }
 0x127   :  { %1806 = vmatprep.subr.bf16.mxu0 %v5374_v18  ;;  %1970 = vmatprep.subr.bf16.mxu1 %v5377_v19  ;;  %v5467_v18 = vld [vmem:[#allocation5 + $0x62c] ss:$16 sps:$4 sm:$0xff]   ;;  %v161_v19 = vpack.c.bf16 %v153_v16, %v153_v16  ;;  %v5557_v16 = vld [vmem:[#allocation8 + $0xc] ss:$16 sps:$4 sm:$0xff]  }
 0x12a   :  { %1807 = vmatpush1.bf16.msra.mxu0 %v5372_v20  ;;  %1971 = vmatpush1.bf16.msra.mxu1 %v5375_v21  ;;  %v5462_v20 = vld [vmem:[#allocation5 + $0x620] ss:$16 sps:$4 sm:$0xff]   ;;  %v5465_v21 = vld [vmem:[#allocation5 + $0x628] ss:$16 sps:$4 sm:$0xff]  }
 0x12b   :  { %1808 = vmatprep.subr.bf16.mxu0 %v5380_v22  ;;  %1972 = vmatprep.subr.bf16.mxu1 %v5383_v23  ;;  %v5470_v22 = vld [vmem:[#allocation5 + $0x644] ss:$16 sps:$4 sm:$0xff]   ;;  %v5473_v23 = vld [vmem:[#allocation5 + $0x64c] ss:$16 sps:$4 sm:$0xff]  }
 0x12e   :  { %1809 = vmatpush1.bf16.msra.mxu0 %v5378_v24  ;;  %1973 = vmatpush1.bf16.msra.mxu1 %v5381_v25  ;;  %v5468_v24 = vld [vmem:[#allocation5 + $0x640] ss:$16 sps:$4 sm:$0xff]   ;;  %v5471_v25 = vld [vmem:[#allocation5 + $0x648] ss:$16 sps:$4 sm:$0xff]  }
 0x12f   :  { %1810 = vmatprep.subr.bf16.mxu0 %v5386_v26  ;;  %1974 = vmatprep.subr.bf16.mxu1 %v5389_v27  ;;  %v5476_v26 = vld [vmem:[#allocation5 + $0x664] ss:$16 sps:$4 sm:$0xff]   ;;  %v5479_v27 = vld [vmem:[#allocation5 + $0x66c] ss:$16 sps:$4 sm:$0xff]  }
 0x132   :  { %1811 = vmatpush1.bf16.msra.mxu0 %v5384_v28  ;;  %1975 = vmatpush1.bf16.msra.mxu1 %v5387_v29  ;;  %v5474_v28 = vld [vmem:[#allocation5 + $0x660] ss:$16 sps:$4 sm:$0xff]   ;;  %v5477_v29 = vld [vmem:[#allocation5 + $0x668] ss:$16 sps:$4 sm:$0xff]  }
 0x133   :  { %1812 = vmatprep.subr.bf16.mxu0 %v5392_v30  ;;  %1976 = vmatprep.subr.bf16.mxu1 %v5395_v31  ;;  %v5482_v30 = vld [vmem:[#allocation5 + $0x684] ss:$16 sps:$4 sm:$0xff]   ;;  %v5485_v31 = vld [vmem:[#allocation5 + $0x68c] ss:$16 sps:$4 sm:$0xff]  }
 0x136   :  { %1813 = vmatpush1.bf16.msra.mxu0 %v5390_v32  ;;  %1977 = vmatpush1.bf16.msra.mxu1 %v5393_v33  ;;  %v5480_v32 = vld [vmem:[#allocation5 + $0x680] ss:$16 sps:$4 sm:$0xff]   ;;  %v5483_v33 = vld [vmem:[#allocation5 + $0x688] ss:$16 sps:$4 sm:$0xff]  }
 0x137   :  { %1814 = vmatprep.subr.bf16.mxu0 %v5398_v34  ;;  %1978 = vmatprep.subr.bf16.mxu1 %v5401_v35  ;;  %v5488_v34 = vld [vmem:[#allocation5 + $0x6a4] ss:$16 sps:$4 sm:$0xff]   ;;  %v5491_v35 = vld [vmem:[#allocation5 + $0x6ac] ss:$16 sps:$4 sm:$0xff]  }
 0x13a   :  { %1815 = vmatpush1.bf16.msra.mxu0 %v5396_v36  ;;  %1979 = vmatpush1.bf16.msra.mxu1 %v5399_v37  ;;  %v5486_v36 = vld [vmem:[#allocation5 + $0x6a0] ss:$16 sps:$4 sm:$0xff]   ;;  %v5489_v37 = vld [vmem:[#allocation5 + $0x6a8] ss:$16 sps:$4 sm:$0xff]  }
 0x13b   :  { %1816 = vmatprep.subr.bf16.mxu0 %v5404_v38  ;;  %1980 = vmatprep.subr.bf16.mxu1 %v5407_v39  ;;  %v5494_v38 = vld [vmem:[#allocation5 + $0x6c4] ss:$16 sps:$4 sm:$0xff]   ;;  %v5497_v39 = vld [vmem:[#allocation5 + $0x6cc] ss:$16 sps:$4 sm:$0xff]  }
 0x13e   :  { %1817 = vmatpush1.bf16.msra.mxu0 %v5402_v40  ;;  %1981 = vmatpush1.bf16.msra.mxu1 %v5405_v41  ;;  %v5492_v40 = vld [vmem:[#allocation5 + $0x6c0] ss:$16 sps:$4 sm:$0xff]   ;;  %v5495_v41 = vld [vmem:[#allocation5 + $0x6c8] ss:$16 sps:$4 sm:$0xff]  }
 0x13f   :  { %1818 = vmatprep.subr.bf16.mxu0 %v5410_v42  ;;  %1982 = vmatprep.subr.bf16.mxu1 %v5413_v43  ;;  %v5500_v42 = vld [vmem:[#allocation5 + $0x6e4] ss:$16 sps:$4 sm:$0xff]   ;;  %v5503_v43 = vld [vmem:[#allocation5 + $0x6ec] ss:$16 sps:$4 sm:$0xff]  }
 0x142   :  { %1819 = vmatpush1.bf16.msra.mxu0 %v5408_v44  ;;  %1983 = vmatpush1.bf16.msra.mxu1 %v5411_v45  ;;  %v5498_v44 = vld [vmem:[#allocation5 + $0x6e0] ss:$16 sps:$4 sm:$0xff]   ;;  %v5501_v45 = vld [vmem:[#allocation5 + $0x6e8] ss:$16 sps:$4 sm:$0xff]  }
 0x143   :  { %1820 = vmatprep.subr.bf16.mxu0 %v5416_v46  ;;  %1984 = vmatprep.subr.bf16.mxu1 %v5419_v47  ;;  %v5506_v46 = vld [vmem:[#allocation5 + $0x704] ss:$16 sps:$4 sm:$0xff]   ;;  %v5509_v47 = vld [vmem:[#allocation5 + $0x70c] ss:$16 sps:$4 sm:$0xff]  }
 0x146   :  { %1821 = vmatpush1.bf16.msra.mxu0 %v5414_v48  ;;  %1985 = vmatpush1.bf16.msra.mxu1 %v5417_v49  ;;  %v5504_v48 = vld [vmem:[#allocation5 + $0x700] ss:$16 sps:$4 sm:$0xff]   ;;  %v5507_v49 = vld [vmem:[#allocation5 + $0x708] ss:$16 sps:$4 sm:$0xff]  }
 0x147   :  { %1822 = vmatprep.subr.bf16.mxu0 %v5422_v50  ;;  %1986 = vmatprep.subr.bf16.mxu1 %v5425_v51  ;;  %v5512_v50 = vld [vmem:[#allocation5 + $0x724] ss:$16 sps:$4 sm:$0xff]   ;;  %v5515_v51 = vld [vmem:[#allocation5 + $0x72c] ss:$16 sps:$4 sm:$0xff]  }
 0x14a   :  { %1823 = vmatpush1.bf16.msra.mxu0 %v5420_v52  ;;  %1987 = vmatpush1.bf16.msra.mxu1 %v5423_v53  ;;  %v5510_v52 = vld [vmem:[#allocation5 + $0x720] ss:$16 sps:$4 sm:$0xff]   ;;  %v5513_v53 = vld [vmem:[#allocation5 + $0x728] ss:$16 sps:$4 sm:$0xff]  }
 0x14b   :  { %1824 = vmatprep.subr.bf16.mxu0 %v5428_v54  ;;  %1988 = vmatprep.subr.bf16.mxu1 %v5431_v55  ;;  %v5518_v54 = vld [vmem:[#allocation5 + $0x744] ss:$16 sps:$4 sm:$0xff]   ;;  %v5521_v55 = vld [vmem:[#allocation5 + $0x74c] ss:$16 sps:$4 sm:$0xff]  }
 0x14e   :  { %1825 = vmatpush1.bf16.msra.mxu0 %v5426_v56  ;;  %1989 = vmatpush1.bf16.msra.mxu1 %v5429_v57  ;;  %v5516_v56 = vld [vmem:[#allocation5 + $0x740] ss:$16 sps:$4 sm:$0xff]   ;;  %v5519_v57 = vld [vmem:[#allocation5 + $0x748] ss:$16 sps:$4 sm:$0xff]  }
 0x14f   :  { %1826 = vmatprep.subr.bf16.mxu0 %v5434_v58  ;;  %1990 = vmatprep.subr.bf16.mxu1 %v5437_v59  ;;  %v5524_v58 = vld [vmem:[#allocation5 + $0x764] ss:$16 sps:$4 sm:$0xff]   ;;  %v5527_v59 = vld [vmem:[#allocation5 + $0x76c] ss:$16 sps:$4 sm:$0xff]  }
 0x152   :  { %1827 = vmatpush1.bf16.msra.mxu0 %v5432_v60  ;;  %1991 = vmatpush1.bf16.msra.mxu1 %v5435_v61  ;;  %v5522_v60 = vld [vmem:[#allocation5 + $0x760] ss:$16 sps:$4 sm:$0xff]   ;;  %v5525_v61 = vld [vmem:[#allocation5 + $0x768] ss:$16 sps:$4 sm:$0xff]  }
 0x153   :  { %1828 = vmatprep.subr.bf16.mxu0 %v5440_v62  ;;  %1992 = vmatprep.subr.bf16.mxu1 %v5443_v63  ;;  %v5530_v62 = vld [vmem:[#allocation5 + $0x784] ss:$16 sps:$4 sm:$0xff]   ;;  %v5533_v63 = vld [vmem:[#allocation5 + $0x78c] ss:$16 sps:$4 sm:$0xff]  }
 0x156   :  { %1829 = vmatpush1.bf16.msra.mxu0 %v5438_v0  ;;  %1993 = vmatpush1.bf16.msra.mxu1 %v5441_v1  ;;  %v5528_v0 = vld [vmem:[#allocation5 + $0x780] ss:$16 sps:$4 sm:$0xff]   ;;  %v5531_v1 = vld [vmem:[#allocation5 + $0x788] ss:$16 sps:$4 sm:$0xff]  }
 0x157   :  { %1830 = vmatprep.subr.bf16.mxu0 %v5446_v2  ;;  %1994 = vmatprep.subr.bf16.mxu1 %v5449_v3  ;;  %v5536_v2 = vld [vmem:[#allocation5 + $0x7a4] ss:$16 sps:$4 sm:$0xff]   ;;  %v5539_v3 = vld [vmem:[#allocation5 + $0x7ac] ss:$16 sps:$4 sm:$0xff]  }
 0x15a   :  { %1831 = vmatpush1.bf16.msra.mxu0 %v5444_v4  ;;  %1995 = vmatpush1.bf16.msra.mxu1 %v5447_v5  ;;  %v5534_v4 = vld [vmem:[#allocation5 + $0x7a0] ss:$16 sps:$4 sm:$0xff]   ;;  %v5537_v5 = vld [vmem:[#allocation5 + $0x7a8] ss:$16 sps:$4 sm:$0xff]  }
 0x15b   :  { %1832 = vmatprep.subr.bf16.mxu0 %v5452_v6  ;;  %1996 = vmatprep.subr.bf16.mxu1 %v5455_v7  ;;  %v5542_v6 = vld [vmem:[#allocation5 + $0x7c4] ss:$16 sps:$4 sm:$0xff]   ;;  %v5545_v7 = vld [vmem:[#allocation5 + $0x7cc] ss:$16 sps:$4 sm:$0xff]  }
 0x15e   :  { %1833 = vmatpush1.bf16.msra.mxu0 %v5450_v8  ;;  %1997 = vmatpush1.bf16.msra.mxu1 %v5453_v9  ;;  %v5540_v8 = vld [vmem:[#allocation5 + $0x7c0] ss:$16 sps:$4 sm:$0xff]   ;;  %v5543_v9 = vld [vmem:[#allocation5 + $0x7c8] ss:$16 sps:$4 sm:$0xff]  }
 0x15f   :  { %1843 = vmatprep.subr.bf16.mxu0 %v5458_v10  ;;  %2007 = vmatprep.subr.bf16.mxu1 %v5461_v12  ;;  %v5548_v10 = vld [vmem:[#allocation5 + $0x7e4] ss:$16 sps:$4 sm:$0xff]   ;;  %v5546_v12 = vld [vmem:[#allocation5 + $0x7e0] ss:$16 sps:$4 sm:$0xff]  }
 0x161   :  { %1835 = vmatmul.mubr.bf16.vlgmr.msra.gmra.mrb[0].mxu0 %v158_v15  ;;  %1999 = vmatmul.mubr.bf16.vlgmr.msra.gmra.mrb[0].mxu1 %v158_v15  ;;  %v5554_v15 = vld [vmem:[#allocation8 + $0x4] ss:$16 sps:$4 sm:$0xff]  }
 0x162   :  { %1844 = vmatpush1.bf16.msra.mxu0 %v5456_v13  ;;  %2008 = vmatpush1.bf16.msra.mxu1 %v5459_v14  ;;  %v5549_v13 = vld [vmem:[#allocation5 + $0x7e8] ss:$16 sps:$4 sm:$0xff]   ;;  %v152_v14 = vld [vmem:[#allocation2 + $0x30] sm:$0xff] }
 0x163   :  { %1845 = vmatprep.subr.bf16.mxu0 %v5464_v17  ;;  %2009 = vmatprep.subr.bf16.mxu1 %v5467_v18  ;;  %v5552_v17 = vld [vmem:[#allocation8] ss:$16 sps:$4 sm:$0xff]   ;;  %v5555_v18 = vld [vmem:[#allocation8 + $0x8] ss:$16 sps:$4 sm:$0xff]  }
 0x164   :  { %1875 = vmatprep.mubr.bf16.mxu0 %v161_v19  ;;  %2039 = vmatprep.mubr.bf16.mxu1 %v161_v19  ;;  %v160_v19 = vpack.c.bf16 %v152_v14, %v152_v14  ;;  %v5642_v14 = vld [vmem:[#allocation8 + $0x1e0] ss:$16 sps:$4 sm:$0xff]  }
 0x166   :  { %1846 = vmatpush1.bf16.msra.mxu0 %v5462_v20  ;;  %2010 = vmatpush1.bf16.msra.mxu1 %v5465_v21  ;;  %v5560_v20 = vld [vmem:[#allocation8 + $0x24] ss:$16 sps:$4 sm:$0xff]   ;;  %v5563_v21 = vld [vmem:[#allocation8 + $0x2c] ss:$16 sps:$4 sm:$0xff]  }
 0x167   :  { %1847 = vmatprep.subr.bf16.mxu0 %v5470_v22  ;;  %2011 = vmatprep.subr.bf16.mxu1 %v5473_v23  ;;  %v5558_v22 = vld [vmem:[#allocation8 + $0x20] ss:$16 sps:$4 sm:$0xff]   ;;  %v5561_v23 = vld [vmem:[#allocation8 + $0x28] ss:$16 sps:$4 sm:$0xff]  }
 0x16a   :  { %1848 = vmatpush1.bf16.msra.mxu0 %v5468_v24  ;;  %2012 = vmatpush1.bf16.msra.mxu1 %v5471_v25  ;;  %v5566_v24 = vld [vmem:[#allocation8 + $0x44] ss:$16 sps:$4 sm:$0xff]   ;;  %v5569_v25 = vld [vmem:[#allocation8 + $0x4c] ss:$16 sps:$4 sm:$0xff]  }
 0x16b   :  { %1849 = vmatprep.subr.bf16.mxu0 %v5476_v26  ;;  %2013 = vmatprep.subr.bf16.mxu1 %v5479_v27  ;;  %v5564_v26 = vld [vmem:[#allocation8 + $0x40] ss:$16 sps:$4 sm:$0xff]   ;;  %v5567_v27 = vld [vmem:[#allocation8 + $0x48] ss:$16 sps:$4 sm:$0xff]  }
 0x16e   :  { %1850 = vmatpush1.bf16.msra.mxu0 %v5474_v28  ;;  %2014 = vmatpush1.bf16.msra.mxu1 %v5477_v29  ;;  %v5572_v28 = vld [vmem:[#allocation8 + $0x64] ss:$16 sps:$4 sm:$0xff]   ;;  %v5575_v29 = vld [vmem:[#allocation8 + $0x6c] ss:$16 sps:$4 sm:$0xff]  }
 0x16f   :  { %1851 = vmatprep.subr.bf16.mxu0 %v5482_v30  ;;  %2015 = vmatprep.subr.bf16.mxu1 %v5485_v31  ;;  %v5570_v30 = vld [vmem:[#allocation8 + $0x60] ss:$16 sps:$4 sm:$0xff]   ;;  %v5573_v31 = vld [vmem:[#allocation8 + $0x68] ss:$16 sps:$4 sm:$0xff]  }
 0x172   :  { %1852 = vmatpush1.bf16.msra.mxu0 %v5480_v32  ;;  %2016 = vmatpush1.bf16.msra.mxu1 %v5483_v33  ;;  %v5578_v32 = vld [vmem:[#allocation8 + $0x84] ss:$16 sps:$4 sm:$0xff]   ;;  %v5581_v33 = vld [vmem:[#allocation8 + $0x8c] ss:$16 sps:$4 sm:$0xff]  }
 0x173   :  { %1853 = vmatprep.subr.bf16.mxu0 %v5488_v34  ;;  %2017 = vmatprep.subr.bf16.mxu1 %v5491_v35  ;;  %v5576_v34 = vld [vmem:[#allocation8 + $0x80] ss:$16 sps:$4 sm:$0xff]   ;;  %v5579_v35 = vld [vmem:[#allocation8 + $0x88] ss:$16 sps:$4 sm:$0xff]  }
 0x176   :  { %1854 = vmatpush1.bf16.msra.mxu0 %v5486_v36  ;;  %2018 = vmatpush1.bf16.msra.mxu1 %v5489_v37  ;;  %v5584_v36 = vld [vmem:[#allocation8 + $0xa4] ss:$16 sps:$4 sm:$0xff]   ;;  %v5587_v37 = vld [vmem:[#allocation8 + $0xac] ss:$16 sps:$4 sm:$0xff]  }
 0x177   :  { %1855 = vmatprep.subr.bf16.mxu0 %v5494_v38  ;;  %2019 = vmatprep.subr.bf16.mxu1 %v5497_v39  ;;  %v5582_v38 = vld [vmem:[#allocation8 + $0xa0] ss:$16 sps:$4 sm:$0xff]   ;;  %v5585_v39 = vld [vmem:[#allocation8 + $0xa8] ss:$16 sps:$4 sm:$0xff]  }
 0x17a   :  { %1856 = vmatpush1.bf16.msra.mxu0 %v5492_v40  ;;  %2020 = vmatpush1.bf16.msra.mxu1 %v5495_v41  ;;  %v5590_v40 = vld [vmem:[#allocation8 + $0xc4] ss:$16 sps:$4 sm:$0xff]   ;;  %v5593_v41 = vld [vmem:[#allocation8 + $0xcc] ss:$16 sps:$4 sm:$0xff]  }
 0x17b   :  { %1857 = vmatprep.subr.bf16.mxu0 %v5500_v42  ;;  %2021 = vmatprep.subr.bf16.mxu1 %v5503_v43  ;;  %v5588_v42 = vld [vmem:[#allocation8 + $0xc0] ss:$16 sps:$4 sm:$0xff]   ;;  %v5591_v43 = vld [vmem:[#allocation8 + $0xc8] ss:$16 sps:$4 sm:$0xff]  }
 0x17e   :  { %1858 = vmatpush1.bf16.msra.mxu0 %v5498_v44  ;;  %2022 = vmatpush1.bf16.msra.mxu1 %v5501_v45  ;;  %v5596_v44 = vld [vmem:[#allocation8 + $0xe4] ss:$16 sps:$4 sm:$0xff]   ;;  %v5599_v45 = vld [vmem:[#allocation8 + $0xec] ss:$16 sps:$4 sm:$0xff]  }
 0x17f   :  { %1859 = vmatprep.subr.bf16.mxu0 %v5506_v46  ;;  %2023 = vmatprep.subr.bf16.mxu1 %v5509_v47  ;;  %v5594_v46 = vld [vmem:[#allocation8 + $0xe0] ss:$16 sps:$4 sm:$0xff]   ;;  %v5597_v47 = vld [vmem:[#allocation8 + $0xe8] ss:$16 sps:$4 sm:$0xff]  }
 0x182   :  { %1860 = vmatpush1.bf16.msra.mxu0 %v5504_v48  ;;  %2024 = vmatpush1.bf16.msra.mxu1 %v5507_v49  ;;  %v5602_v48 = vld [vmem:[#allocation8 + $0x104] ss:$16 sps:$4 sm:$0xff]   ;;  %v5605_v49 = vld [vmem:[#allocation8 + $0x10c] ss:$16 sps:$4 sm:$0xff]  }
 0x183   :  { %1861 = vmatprep.subr.bf16.mxu0 %v5512_v50  ;;  %2025 = vmatprep.subr.bf16.mxu1 %v5515_v51  ;;  %v5600_v50 = vld [vmem:[#allocation8 + $0x100] ss:$16 sps:$4 sm:$0xff]   ;;  %v5603_v51 = vld [vmem:[#allocation8 + $0x108] ss:$16 sps:$4 sm:$0xff]  }
 0x186   :  { %1862 = vmatpush1.bf16.msra.mxu0 %v5510_v52  ;;  %2026 = vmatpush1.bf16.msra.mxu1 %v5513_v53  ;;  %v5608_v52 = vld [vmem:[#allocation8 + $0x124] ss:$16 sps:$4 sm:$0xff]   ;;  %v5611_v53 = vld [vmem:[#allocation8 + $0x12c] ss:$16 sps:$4 sm:$0xff]  }
 0x187   :  { %1863 = vmatprep.subr.bf16.mxu0 %v5518_v54  ;;  %2027 = vmatprep.subr.bf16.mxu1 %v5521_v55  ;;  %v5606_v54 = vld [vmem:[#allocation8 + $0x120] ss:$16 sps:$4 sm:$0xff]   ;;  %v5609_v55 = vld [vmem:[#allocation8 + $0x128] ss:$16 sps:$4 sm:$0xff]  }
 0x18a   :  { %1864 = vmatpush1.bf16.msra.mxu0 %v5516_v56  ;;  %2028 = vmatpush1.bf16.msra.mxu1 %v5519_v57  ;;  %v5614_v56 = vld [vmem:[#allocation8 + $0x144] ss:$16 sps:$4 sm:$0xff]   ;;  %v5617_v57 = vld [vmem:[#allocation8 + $0x14c] ss:$16 sps:$4 sm:$0xff]  }
 0x18b   :  { %1865 = vmatprep.subr.bf16.mxu0 %v5524_v58  ;;  %2029 = vmatprep.subr.bf16.mxu1 %v5527_v59  ;;  %v5612_v58 = vld [vmem:[#allocation8 + $0x140] ss:$16 sps:$4 sm:$0xff]   ;;  %v5615_v59 = vld [vmem:[#allocation8 + $0x148] ss:$16 sps:$4 sm:$0xff]  }
 0x18e   :  { %1866 = vmatpush1.bf16.msra.mxu0 %v5522_v60  ;;  %2030 = vmatpush1.bf16.msra.mxu1 %v5525_v61  ;;  %v5620_v60 = vld [vmem:[#allocation8 + $0x164] ss:$16 sps:$4 sm:$0xff]   ;;  %v5623_v61 = vld [vmem:[#allocation8 + $0x16c] ss:$16 sps:$4 sm:$0xff]  }
 0x18f   :  { %1867 = vmatprep.subr.bf16.mxu0 %v5530_v62  ;;  %2031 = vmatprep.subr.bf16.mxu1 %v5533_v63  ;;  %v5618_v62 = vld [vmem:[#allocation8 + $0x160] ss:$16 sps:$4 sm:$0xff]   ;;  %v5621_v63 = vld [vmem:[#allocation8 + $0x168] ss:$16 sps:$4 sm:$0xff]  }
 0x192   :  { %1868 = vmatpush1.bf16.msra.mxu0 %v5528_v0  ;;  %2032 = vmatpush1.bf16.msra.mxu1 %v5531_v1  ;;  %v5626_v0 = vld [vmem:[#allocation8 + $0x184] ss:$16 sps:$4 sm:$0xff]   ;;  %v5629_v1 = vld [vmem:[#allocation8 + $0x18c] ss:$16 sps:$4 sm:$0xff]  }
 0x193   :  { %1869 = vmatprep.subr.bf16.mxu0 %v5536_v2  ;;  %2033 = vmatprep.subr.bf16.mxu1 %v5539_v3  ;;  %v5624_v2 = vld [vmem:[#allocation8 + $0x180] ss:$16 sps:$4 sm:$0xff]   ;;  %v5627_v3 = vld [vmem:[#allocation8 + $0x188] ss:$16 sps:$4 sm:$0xff]  }
 0x196   :  { %1870 = vmatpush1.bf16.msra.mxu0 %v5534_v4  ;;  %2034 = vmatpush1.bf16.msra.mxu1 %v5537_v5  ;;  %v5632_v4 = vld [vmem:[#allocation8 + $0x1a4] ss:$16 sps:$4 sm:$0xff]   ;;  %v5635_v5 = vld [vmem:[#allocation8 + $0x1ac] ss:$16 sps:$4 sm:$0xff]  }
 0x197   :  { %1871 = vmatprep.subr.bf16.mxu0 %v5542_v6  ;;  %2035 = vmatprep.subr.bf16.mxu1 %v5545_v7  ;;  %v5630_v6 = vld [vmem:[#allocation8 + $0x1a0] ss:$16 sps:$4 sm:$0xff]   ;;  %v5633_v7 = vld [vmem:[#allocation8 + $0x1a8] ss:$16 sps:$4 sm:$0xff]  }
 0x19a   :  { %1872 = vmatpush1.bf16.msra.mxu0 %v5540_v8  ;;  %2036 = vmatpush1.bf16.msra.mxu1 %v5543_v9  ;;  %v5638_v8 = vld [vmem:[#allocation8 + $0x1c4] ss:$16 sps:$4 sm:$0xff]   ;;  %v5641_v9 = vld [vmem:[#allocation8 + $0x1cc] ss:$16 sps:$4 sm:$0xff]  }
 0x19b   :  { %1873 = vmatprep.subr.bf16.mxu0 %v5548_v10  ;;  %2037 = vmatprep.subr.bf16.mxu1 %v5551_v11  ;;  %v5636_v10 = vld [vmem:[#allocation8 + $0x1c0] ss:$16 sps:$4 sm:$0xff]   ;;  %v5639_v11 = vld [vmem:[#allocation8 + $0x1c8] ss:$16 sps:$4 sm:$0xff]  }
 0x19e   :  { %1874 = vmatpush1.bf16.msra.mxu0 %v5546_v12  ;;  %2038 = vmatpush1.bf16.msra.mxu1 %v5549_v13  ;;  %v5644_v12 = vld [vmem:[#allocation8 + $0x1e4] ss:$16 sps:$4 sm:$0xff]   ;;  %v5647_v13 = vld [vmem:[#allocation8 + $0x1ec] ss:$16 sps:$4 sm:$0xff]  }
 0x19f   :  { %2846 = vmatprep.subr.bf16.mxu0 %v5554_v15  ;;  %2928 = vmatprep.subr.bf16.mxu1 %v5557_v16  ;;  %v5645_v15 = vld [vmem:[#allocation8 + $0x1e8] ss:$16 sps:$4 sm:$0xff]   ;;  %v5650_v16 = vld [vmem:[#allocation8 + $0x204] ss:$16 sps:$4 sm:$0xff]  }
 0x1a1   :  { %1876 = vmatmul.mubr.bf16.vlgmr.msra.gmra.mrb[0].mxu0 %v160_v19  ;;  %2040 = vmatmul.mubr.bf16.vlgmr.msra.gmra.mrb[0].mxu1 %v160_v19 }
 0x1a2   :  { %2847 = vmatpush1.bf16.msra.mxu0 %v5552_v17  ;;  %2929 = vmatpush1.bf16.msra.mxu1 %v5555_v18  ;;  %v5653_v17 = vld [vmem:[#allocation8 + $0x20c] ss:$16 sps:$4 sm:$0xff]   ;;  %v420_v18 = vlaneseq }
 0x1a3   :  { %2848 = vmatprep.subr.bf16.mxu0 %v5560_v20  ;;  %2930 = vmatprep.subr.bf16.mxu1 %v5563_v21  ;;  %v6397_v21 = vld [vmem:[#allocation7] sm:$0xf] }
 0x1a4   :  { %v6392_v19 = vshrl.u32 %v420_v18, 7  ;;  %v5710_v18 = vld [vmem:[#allocation8 + $0x344] ss:$16 sps:$4 sm:$0xff]  }
 0x1a6   :  { %2849 = vmatpush1.bf16.msra.mxu0 %v5558_v22  ;;  %2931 = vmatpush1.bf16.msra.mxu1 %v5561_v23  ;;  %v6395_v20 = vsub.s32 0, %v6392_v19  ;;  %v6400_v22 = vsub.s32 1, %v6392_v19  ;;  %v6403_v23 = vsub.s32 3, %v6392_v19 }
 0x1a7   :  { %2850 = vmatprep.subr.bf16.mxu0 %v5566_v24  ;;  %2932 = vmatprep.subr.bf16.mxu1 %v5569_v25 }
 0x1a8   :  { %v423_v24 = vrot.slane %v6397_v21, %v6395_v20  ;;  %v427_v25 = vrot.slane %v6397_v21, %v6400_v22 }
 0x1aa   :  { %2851 = vmatpush1.bf16.msra.mxu0 %v5564_v26  ;;  %2933 = vmatpush1.bf16.msra.mxu1 %v5567_v27  ;;  %v435_v26 = vrot.slane %v6397_v21, %v6403_v23 }
 0x1ab   :  { %2852 = vmatprep.subr.bf16.mxu0 %v5572_v28  ;;  %2934 = vmatprep.subr.bf16.mxu1 %v5575_v29 }
 0x1ae   :  { %2853 = vmatpush1.bf16.msra.mxu0 %v5570_v30  ;;  %2935 = vmatpush1.bf16.msra.mxu1 %v5573_v31 }
 0x1af   :  { %2854 = vmatprep.subr.bf16.mxu0 %v5578_v32  ;;  %2936 = vmatprep.subr.bf16.mxu1 %v5581_v33 }
 0x1b2   :  { %2855 = vmatpush1.bf16.msra.mxu0 %v5576_v34  ;;  %2937 = vmatpush1.bf16.msra.mxu1 %v5579_v35 }
 0x1b3   :  { %2856 = vmatprep.subr.bf16.mxu0 %v5584_v36  ;;  %2938 = vmatprep.subr.bf16.mxu1 %v5587_v37 }
 0x1b6   :  { %2857 = vmatpush1.bf16.msra.mxu0 %v5582_v38  ;;  %2939 = vmatpush1.bf16.msra.mxu1 %v5585_v39 }
 0x1b7   :  { %2858 = vmatprep.subr.bf16.mxu0 %v5590_v40  ;;  %2940 = vmatprep.subr.bf16.mxu1 %v5593_v41 }
 0x1ba   :  { %2859 = vmatpush1.bf16.msra.mxu0 %v5588_v42  ;;  %2941 = vmatpush1.bf16.msra.mxu1 %v5591_v43  ;;  %v5648_v42 = vld [vmem:[#allocation8 + $0x200] ss:$16 sps:$4 sm:$0xff]   ;;  %v5651_v43 = vld [vmem:[#allocation8 + $0x208] ss:$16 sps:$4 sm:$0xff]  }
 0x1bb   :  { %2860 = vmatprep.subr.bf16.mxu0 %v5596_v44  ;;  %2942 = vmatprep.subr.bf16.mxu1 %v5599_v45  ;;  %v5656_v45 = vld [vmem:[#allocation8 + $0x224] ss:$16 sps:$4 sm:$0xff]  }
 0x1be   :  { %2861 = vmatpush1.bf16.msra.mxu0 %v5594_v46  ;;  %2943 = vmatpush1.bf16.msra.mxu1 %v5597_v47  ;;  %v5659_v46 = vld [vmem:[#allocation8 + $0x22c] ss:$16 sps:$4 sm:$0xff]  }
 0x1bf   :  { %2862 = vmatprep.subr.bf16.mxu0 %v5602_v48  ;;  %2944 = vmatprep.subr.bf16.mxu1 %v5605_v49  ;;  %v5654_v48 = vld [vmem:[#allocation8 + $0x220] ss:$16 sps:$4 sm:$0xff]   ;;  %v5657_v49 = vld [vmem:[#allocation8 + $0x228] ss:$16 sps:$4 sm:$0xff]  }
 0x1c2   :  { %2863 = vmatpush1.bf16.msra.mxu0 %v5600_v50  ;;  %2945 = vmatpush1.bf16.msra.mxu1 %v5603_v51  ;;  %v5662_v50 = vld [vmem:[#allocation8 + $0x244] ss:$16 sps:$4 sm:$0xff]   ;;  %v5665_v51 = vld [vmem:[#allocation8 + $0x24c] ss:$16 sps:$4 sm:$0xff]  }
 0x1c3   :  { %2864 = vmatprep.subr.bf16.mxu0 %v5608_v52  ;;  %2946 = vmatprep.subr.bf16.mxu1 %v5611_v53  ;;  %v5660_v52 = vld [vmem:[#allocation8 + $0x240] ss:$16 sps:$4 sm:$0xff]   ;;  %v5663_v53 = vld [vmem:[#allocation8 + $0x248] ss:$16 sps:$4 sm:$0xff]  }
 0x1c6   :  { %2865 = vmatpush1.bf16.msra.mxu0 %v5606_v54  ;;  %2947 = vmatpush1.bf16.msra.mxu1 %v5609_v55  ;;  %v5668_v54 = vld [vmem:[#allocation8 + $0x264] ss:$16 sps:$4 sm:$0xff]   ;;  %v5671_v55 = vld [vmem:[#allocation8 + $0x26c] ss:$16 sps:$4 sm:$0xff]  }
 0x1c7   :  { %2866 = vmatprep.subr.bf16.mxu0 %v5614_v56  ;;  %2948 = vmatprep.subr.bf16.mxu1 %v5617_v57  ;;  %v5666_v56 = vld [vmem:[#allocation8 + $0x260] ss:$16 sps:$4 sm:$0xff]   ;;  %v5669_v57 = vld [vmem:[#allocation8 + $0x268] ss:$16 sps:$4 sm:$0xff]  }
 0x1ca   :  { %2867 = vmatpush1.bf16.msra.mxu0 %v5612_v58  ;;  %2949 = vmatpush1.bf16.msra.mxu1 %v5615_v59  ;;  %v5674_v58 = vld [vmem:[#allocation8 + $0x284] ss:$16 sps:$4 sm:$0xff]   ;;  %v5677_v59 = vld [vmem:[#allocation8 + $0x28c] ss:$16 sps:$4 sm:$0xff]  }
 0x1cb   :  { %2868 = vmatprep.subr.bf16.mxu0 %v5620_v60  ;;  %2950 = vmatprep.subr.bf16.mxu1 %v5623_v61  ;;  %v5672_v60 = vld [vmem:[#allocation8 + $0x280] ss:$16 sps:$4 sm:$0xff]   ;;  %v5675_v61 = vld [vmem:[#allocation8 + $0x288] ss:$16 sps:$4 sm:$0xff]  }
 0x1ce   :  { %2869 = vmatpush1.bf16.msra.mxu0 %v5618_v62  ;;  %2951 = vmatpush1.bf16.msra.mxu1 %v5621_v63  ;;  %v5680_v62 = vld [vmem:[#allocation8 + $0x2a4] ss:$16 sps:$4 sm:$0xff]   ;;  %v5683_v63 = vld [vmem:[#allocation8 + $0x2ac] ss:$16 sps:$4 sm:$0xff]  }
 0x1cf   :  { %2870 = vmatprep.subr.bf16.mxu0 %v5626_v0  ;;  %2952 = vmatprep.subr.bf16.mxu1 %v5629_v1  ;;  %v5678_v0 = vld [vmem:[#allocation8 + $0x2a0] ss:$16 sps:$4 sm:$0xff]   ;;  %v5681_v1 = vld [vmem:[#allocation8 + $0x2a8] ss:$16 sps:$4 sm:$0xff]  }
 0x1d2   :  { %2871 = vmatpush1.bf16.msra.mxu0 %v5624_v2  ;;  %2953 = vmatpush1.bf16.msra.mxu1 %v5627_v3  ;;  %v5686_v2 = vld [vmem:[#allocation8 + $0x2c4] ss:$16 sps:$4 sm:$0xff]   ;;  %v5689_v3 = vld [vmem:[#allocation8 + $0x2cc] ss:$16 sps:$4 sm:$0xff]  }
 0x1d3   :  { %2872 = vmatprep.subr.bf16.mxu0 %v5632_v4  ;;  %2954 = vmatprep.subr.bf16.mxu1 %v5635_v5  ;;  %v5684_v4 = vld [vmem:[#allocation8 + $0x2c0] ss:$16 sps:$4 sm:$0xff]   ;;  %v5687_v5 = vld [vmem:[#allocation8 + $0x2c8] ss:$16 sps:$4 sm:$0xff]  }
 0x1d6   :  { %2873 = vmatpush1.bf16.msra.mxu0 %v5630_v6  ;;  %2955 = vmatpush1.bf16.msra.mxu1 %v5633_v7  ;;  %v5692_v6 = vld [vmem:[#allocation8 + $0x2e4] ss:$16 sps:$4 sm:$0xff]   ;;  %v5695_v7 = vld [vmem:[#allocation8 + $0x2ec] ss:$16 sps:$4 sm:$0xff]  }
 0x1d7   :  { %2874 = vmatprep.subr.bf16.mxu0 %v5638_v8  ;;  %2956 = vmatprep.subr.bf16.mxu1 %v5641_v9  ;;  %v5690_v8 = vld [vmem:[#allocation8 + $0x2e0] ss:$16 sps:$4 sm:$0xff]   ;;  %v5693_v9 = vld [vmem:[#allocation8 + $0x2e8] ss:$16 sps:$4 sm:$0xff]  }
 0x1da   :  { %2875 = vmatpush1.bf16.msra.mxu0 %v5636_v10  ;;  %2957 = vmatpush1.bf16.msra.mxu1 %v5639_v11  ;;  %v5698_v10 = vld [vmem:[#allocation8 + $0x304] ss:$16 sps:$4 sm:$0xff]   ;;  %v5701_v11 = vld [vmem:[#allocation8 + $0x30c] ss:$16 sps:$4 sm:$0xff]  }
 0x1db   :  { %2876 = vmatprep.subr.bf16.mxu0 %v5644_v12  ;;  %2958 = vmatprep.subr.bf16.mxu1 %v5647_v13  ;;  %v5696_v12 = vld [vmem:[#allocation8 + $0x300] ss:$16 sps:$4 sm:$0xff]   ;;  %v5699_v13 = vld [vmem:[#allocation8 + $0x308] ss:$16 sps:$4 sm:$0xff]  }
 0x1de   :  { %2877 = vmatpush1.bf16.msra.mxu0 %v5642_v14  ;;  %2959 = vmatpush1.bf16.msra.mxu1 %v5645_v15  ;;  %v5704_v14 = vld [vmem:[#allocation8 + $0x324] ss:$16 sps:$4 sm:$0xff]   ;;  %v5707_v15 = vld [vmem:[#allocation8 + $0x32c] ss:$16 sps:$4 sm:$0xff]  }
 0x1df   :  { %2887 = vmatprep.subr.bf16.mxu0 %v5650_v16  ;;  %2969 = vmatprep.subr.bf16.mxu1 %v5653_v17  ;;  %v5702_v16 = vld [vmem:[#allocation8 + $0x320] ss:$16 sps:$4 sm:$0xff]   ;;  %v5705_v17 = vld [vmem:[#allocation8 + $0x328] ss:$16 sps:$4 sm:$0xff]  }
 0x274   :  { %v1877_v27 = vpop.f32.mrb[0].mxu0  ;;  %v6411_v28 = vpop.f32.mrb[0].mxu1 }
 0x275   :  { %v5101_v29 = vadd.f32 %v1877_v27, %v423_v24  ;;  %v1879_v30 = vpop.f32.mrb[1].mxu0  ;;  %v2043_v31 = vpop.f32.mrb[1].mxu1  ;;  %v5713_v24 = vld [vmem:[#allocation8 + $0x34c] ss:$16 sps:$4 sm:$0xff]   ;;  %v5716_v27 = vld [vmem:[#allocation8 + $0x364] ss:$16 sps:$4 sm:$0xff]  }
 0x276   :  { %v5102_v32 = vadd.f32 %v1879_v30, %v427_v25  ;;  %v5104_v33 = vadd.f32 %v2043_v31, %v435_v26  ;;  %v1881_v34 = vpop.f32.mrb[2].mxu0  ;;  %v2045_v35 = vpop.f32.mrb[2].mxu1  ;;  %v5708_v25 = vld [vmem:[#allocation8 + $0x340] ss:$16 sps:$4 sm:$0xff]   ;;  %v5711_v26 = vld [vmem:[#allocation8 + $0x348] ss:$16 sps:$4 sm:$0xff]  }
 0x277   :  { %v2048_v36 = vmax.f32 %v5101_v29, 0.0  ;;  %v1882_v37 = vpop.f32.mrb[3].mxu0  ;;  %v2046_v38 = vpop.f32.mrb[3].mxu1  ;;  %v5719_v29 = vld [vmem:[#allocation8 + $0x36c] ss:$16 sps:$4 sm:$0xff]  }
 0x278   :  { %v2049_v39 = vmax.f32 %v5102_v32, 0.0  ;;  %v2051_v40 = vmax.f32 %v5104_v33, 0.0  ;;  %v5714_v30 = vld [vmem:[#allocation8 + $0x360] ss:$16 sps:$4 sm:$0xff]   ;;  %v5717_v31 = vld [vmem:[#allocation8 + $0x368] ss:$16 sps:$4 sm:$0xff]  }
 0x279   :  { %v2052_v44 = vpack.c.bf16 %v2048_v36, %v2048_v36  ;;  %v5722_v32 = vld [vmem:[#allocation8 + $0x384] ss:$16 sps:$4 sm:$0xff]   ;;  %v5725_v33 = vld [vmem:[#allocation8 + $0x38c] ss:$16 sps:$4 sm:$0xff]   ;;  %v5720_v34 = vld [vmem:[#allocation8 + $0x380] ss:$16 sps:$4 sm:$0xff]  }
 0x27a   :  { %v2053_v41 = vpack.c.bf16 %v2049_v39, %v2049_v39  ;;  %v2055_v47 = vpack.c.bf16 %v2051_v40, %v2051_v40  ;;  %v5723_v35 = vld [vmem:[#allocation8 + $0x388] ss:$16 sps:$4 sm:$0xff]   ;;  %v6414_v36 = vsub.s32 2, %v6392_v19  ;;  %v5728_v37 = vld [vmem:[#allocation8 + $0x3a4] ss:$16 sps:$4 sm:$0xff]  }
 0x27b   :  { %v5731_v38 = vld [vmem:[#allocation8 + $0x3ac] ss:$16 sps:$4 sm:$0xff]   ;;  %v5726_v39 = vld [vmem:[#allocation8 + $0x3a0] ss:$16 sps:$4 sm:$0xff]   ;;  %v5729_v40 = vld [vmem:[#allocation8 + $0x3a8] ss:$16 sps:$4 sm:$0xff]  }
 0x27c   :  { %2878 = vmatprep.mubr.bf16.mxu0 %v2053_v41  ;;  %2960 = vmatprep.mubr.bf16.mxu1 %v2053_v41  ;;  %v431_v41 = vrot.slane %v6397_v21, %v6414_v36  ;;  %v5735_v19 = vld [vmem:[#allocation8 + $0x3c8] ss:$16 sps:$4 sm:$0xff]  }
 0x27d   :  { %2879 = vmatmul.mubr.bf16.vlgmr.msra.gmra.mrb[4].mxu0 %v2052_v44  ;;  %2961 = vmatmul.mubr.bf16.vlgmr.msra.gmra.mrb[4].mxu1 %v2052_v44  ;;  %v5732_v44 = vld [vmem:[#allocation8 + $0x3c0] ss:$16 sps:$4 sm:$0xff]   ;;  %v5746_v21 = vld [vmem:[#allocation11 + $0x4] ss:$16 sps:$4 sm:$0xff]  }
 0x27e   :  { %2888 = vmatpush1.bf16.msra.mxu0 %v5648_v42  ;;  %2970 = vmatpush1.bf16.msra.mxu1 %v5651_v43  ;;  %v5734_v42 = vld [vmem:[#allocation8 + $0x3c4] ss:$16 sps:$4 sm:$0xff]   ;;  %v5737_v43 = vld [vmem:[#allocation8 + $0x3cc] ss:$16 sps:$4 sm:$0xff]  }
 0x27f   :  { %2919 = vmatprep.mubr.bf16.mxu0 %v2055_v47  ;;  %3001 = vmatprep.mubr.bf16.mxu1 %v2055_v47  ;;  %v5743_v47 = vld [vmem:[#allocation8 + $0x3ec] ss:$16 sps:$4 sm:$0xff]  }
 0x280   :  { %2889 = vmatprep.subr.bf16.mxu0 %v5656_v45  ;;  %2971 = vmatprep.subr.bf16.mxu1 %v5659_v46  ;;  %v5103_v45 = vadd.f32 %v6411_v28, %v431_v41  ;;  %v5740_v46 = vld [vmem:[#allocation8 + $0x3e4] ss:$16 sps:$4 sm:$0xff]   ;;  %v5752_v28 = vld [vmem:[#allocation11 + $0x24] ss:$16 sps:$4 sm:$0xff]  }
 0x281   :  { %v5818_v41 = vld [vmem:[#allocation11 + $0x184] ss:$16 sps:$4 sm:$0xff]  }
 0x282   :  { %2890 = vmatpush1.bf16.msra.mxu0 %v5654_v48  ;;  %2972 = vmatpush1.bf16.msra.mxu1 %v5657_v49  ;;  %v5738_v48 = vld [vmem:[#allocation8 + $0x3e0] ss:$16 sps:$4 sm:$0xff]   ;;  %v5741_v49 = vld [vmem:[#allocation8 + $0x3e8] ss:$16 sps:$4 sm:$0xff]  }
 0x283   :  { %2891 = vmatprep.subr.bf16.mxu0 %v5662_v50  ;;  %2973 = vmatprep.subr.bf16.mxu1 %v5665_v51  ;;  %v2050_v50 = vmax.f32 %v5103_v45, 0.0  ;;  %v5749_v51 = vld [vmem:[#allocation11 + $0xc] ss:$16 sps:$4 sm:$0xff]  }
 0x284   :  { %v5827_v45 = vld [vmem:[#allocation11 + $0x1ac] ss:$16 sps:$4 sm:$0xff]  }
 0x286   :  { %2892 = vmatpush1.bf16.msra.mxu0 %v5660_v52  ;;  %2974 = vmatpush1.bf16.msra.mxu1 %v5663_v53  ;;  %v5744_v52 = vld [vmem:[#allocation11] ss:$16 sps:$4 sm:$0xff]   ;;  %v5747_v53 = vld [vmem:[#allocation11 + $0x8] ss:$16 sps:$4 sm:$0xff]  }
 0x287   :  { %2893 = vmatprep.subr.bf16.mxu0 %v5668_v54  ;;  %2975 = vmatprep.subr.bf16.mxu1 %v5671_v55  ;;  %v2054_v54 = vpack.c.bf16 %v2050_v50, %v2050_v50  ;;  %v5755_v55 = vld [vmem:[#allocation11 + $0x2c] ss:$16 sps:$4 sm:$0xff]   ;;  %v5828_v50 = vld [vmem:[#allocation11 + $0x1c0] ss:$16 sps:$4 sm:$0xff]  }
 0x28a   :  { %2894 = vmatpush1.bf16.msra.mxu0 %v5666_v56  ;;  %2976 = vmatpush1.bf16.msra.mxu1 %v5669_v57  ;;  %v5750_v56 = vld [vmem:[#allocation11 + $0x20] ss:$16 sps:$4 sm:$0xff]   ;;  %v5753_v57 = vld [vmem:[#allocation11 + $0x28] ss:$16 sps:$4 sm:$0xff]  }
 0x28b   :  { %2895 = vmatprep.subr.bf16.mxu0 %v5674_v58  ;;  %2977 = vmatprep.subr.bf16.mxu1 %v5677_v59  ;;  %v5758_v58 = vld [vmem:[#allocation11 + $0x44] ss:$16 sps:$4 sm:$0xff]   ;;  %v5761_v59 = vld [vmem:[#allocation11 + $0x4c] ss:$16 sps:$4 sm:$0xff]  }
 0x28e   :  { %2896 = vmatpush1.bf16.msra.mxu0 %v5672_v60  ;;  %2978 = vmatpush1.bf16.msra.mxu1 %v5675_v61  ;;  %v5756_v60 = vld [vmem:[#allocation11 + $0x40] ss:$16 sps:$4 sm:$0xff]   ;;  %v5759_v61 = vld [vmem:[#allocation11 + $0x48] ss:$16 sps:$4 sm:$0xff]  }
 0x28f   :  { %2897 = vmatprep.subr.bf16.mxu0 %v5680_v62  ;;  %2979 = vmatprep.subr.bf16.mxu1 %v5683_v63  ;;  %v5764_v62 = vld [vmem:[#allocation11 + $0x64] ss:$16 sps:$4 sm:$0xff]   ;;  %v5767_v63 = vld [vmem:[#allocation11 + $0x6c] ss:$16 sps:$4 sm:$0xff]  }
 0x292   :  { %2898 = vmatpush1.bf16.msra.mxu0 %v5678_v0  ;;  %2980 = vmatpush1.bf16.msra.mxu1 %v5681_v1  ;;  %v5762_v0 = vld [vmem:[#allocation11 + $0x60] ss:$16 sps:$4 sm:$0xff]   ;;  %v5765_v1 = vld [vmem:[#allocation11 + $0x68] ss:$16 sps:$4 sm:$0xff]  }
 0x293   :  { %2899 = vmatprep.subr.bf16.mxu0 %v5686_v2  ;;  %2981 = vmatprep.subr.bf16.mxu1 %v5689_v3  ;;  %v5770_v2 = vld [vmem:[#allocation11 + $0x84] ss:$16 sps:$4 sm:$0xff]   ;;  %v5773_v3 = vld [vmem:[#allocation11 + $0x8c] ss:$16 sps:$4 sm:$0xff]  }
 0x296   :  { %2900 = vmatpush1.bf16.msra.mxu0 %v5684_v4  ;;  %2982 = vmatpush1.bf16.msra.mxu1 %v5687_v5  ;;  %v5768_v4 = vld [vmem:[#allocation11 + $0x80] ss:$16 sps:$4 sm:$0xff]   ;;  %v5771_v5 = vld [vmem:[#allocation11 + $0x88] ss:$16 sps:$4 sm:$0xff]  }
 0x297   :  { %2901 = vmatprep.subr.bf16.mxu0 %v5692_v6  ;;  %2983 = vmatprep.subr.bf16.mxu1 %v5695_v7  ;;  %v5776_v6 = vld [vmem:[#allocation11 + $0xa4] ss:$16 sps:$4 sm:$0xff]   ;;  %v5779_v7 = vld [vmem:[#allocation11 + $0xac] ss:$16 sps:$4 sm:$0xff]  }
 0x29a   :  { %2902 = vmatpush1.bf16.msra.mxu0 %v5690_v8  ;;  %2984 = vmatpush1.bf16.msra.mxu1 %v5693_v9  ;;  %v5774_v8 = vld [vmem:[#allocation11 + $0xa0] ss:$16 sps:$4 sm:$0xff]   ;;  %v5777_v9 = vld [vmem:[#allocation11 + $0xa8] ss:$16 sps:$4 sm:$0xff]  }
 0x29b   :  { %2903 = vmatprep.subr.bf16.mxu0 %v5698_v10  ;;  %2985 = vmatprep.subr.bf16.mxu1 %v5701_v11  ;;  %v5782_v10 = vld [vmem:[#allocation11 + $0xc4] ss:$16 sps:$4 sm:$0xff]   ;;  %v5785_v11 = vld [vmem:[#allocation11 + $0xcc] ss:$16 sps:$4 sm:$0xff]  }
 0x29e   :  { %2904 = vmatpush1.bf16.msra.mxu0 %v5696_v12  ;;  %2986 = vmatpush1.bf16.msra.mxu1 %v5699_v13  ;;  %v5780_v12 = vld [vmem:[#allocation11 + $0xc0] ss:$16 sps:$4 sm:$0xff]   ;;  %v5783_v13 = vld [vmem:[#allocation11 + $0xc8] ss:$16 sps:$4 sm:$0xff]  }
 0x29f   :  { %2905 = vmatprep.subr.bf16.mxu0 %v5704_v14  ;;  %2987 = vmatprep.subr.bf16.mxu1 %v5707_v15  ;;  %v5788_v14 = vld [vmem:[#allocation11 + $0xe4] ss:$16 sps:$4 sm:$0xff]   ;;  %v5791_v15 = vld [vmem:[#allocation11 + $0xec] ss:$16 sps:$4 sm:$0xff]  }
 0x2a2   :  { %2906 = vmatpush1.bf16.msra.mxu0 %v5702_v16  ;;  %2988 = vmatpush1.bf16.msra.mxu1 %v5705_v17  ;;  %v5786_v16 = vld [vmem:[#allocation11 + $0xe0] ss:$16 sps:$4 sm:$0xff]   ;;  %v5789_v17 = vld [vmem:[#allocation11 + $0xe8] ss:$16 sps:$4 sm:$0xff]  }
 0x2a3   :  { %2907 = vmatprep.subr.bf16.mxu0 %v5710_v18  ;;  %2989 = vmatprep.subr.bf16.mxu1 %v5713_v24  ;;  %v5794_v18 = vld [vmem:[#allocation11 + $0x104] ss:$16 sps:$4 sm:$0xff]   ;;  %v5797_v24 = vld [vmem:[#allocation11 + $0x10c] ss:$16 sps:$4 sm:$0xff]  }
 0x2a6   :  { %2908 = vmatpush1.bf16.msra.mxu0 %v5708_v25  ;;  %2990 = vmatpush1.bf16.msra.mxu1 %v5711_v26  ;;  %v5792_v25 = vld [vmem:[#allocation11 + $0x100] ss:$16 sps:$4 sm:$0xff]   ;;  %v5795_v26 = vld [vmem:[#allocation11 + $0x108] ss:$16 sps:$4 sm:$0xff]  }
 0x2a7   :  { %2909 = vmatprep.subr.bf16.mxu0 %v5716_v27  ;;  %2991 = vmatprep.subr.bf16.mxu1 %v5719_v29  ;;  %v5800_v27 = vld [vmem:[#allocation11 + $0x124] ss:$16 sps:$4 sm:$0xff]   ;;  %v5803_v29 = vld [vmem:[#allocation11 + $0x12c] ss:$16 sps:$4 sm:$0xff]  }
 0x2aa   :  { %2910 = vmatpush1.bf16.msra.mxu0 %v5714_v30  ;;  %2992 = vmatpush1.bf16.msra.mxu1 %v5717_v31  ;;  %v5798_v30 = vld [vmem:[#allocation11 + $0x120] ss:$16 sps:$4 sm:$0xff]   ;;  %v5801_v31 = vld [vmem:[#allocation11 + $0x128] ss:$16 sps:$4 sm:$0xff]  }
 0x2ab   :  { %2911 = vmatprep.subr.bf16.mxu0 %v5722_v32  ;;  %2993 = vmatprep.subr.bf16.mxu1 %v5725_v33  ;;  %v5806_v32 = vld [vmem:[#allocation11 + $0x144] ss:$16 sps:$4 sm:$0xff]   ;;  %v5809_v33 = vld [vmem:[#allocation11 + $0x14c] ss:$16 sps:$4 sm:$0xff]  }
 0x2ae   :  { %2912 = vmatpush1.bf16.msra.mxu0 %v5720_v34  ;;  %2994 = vmatpush1.bf16.msra.mxu1 %v5723_v35  ;;  %v5804_v34 = vld [vmem:[#allocation11 + $0x140] ss:$16 sps:$4 sm:$0xff]   ;;  %v5807_v35 = vld [vmem:[#allocation11 + $0x148] ss:$16 sps:$4 sm:$0xff]  }
 0x2af   :  { %2913 = vmatprep.subr.bf16.mxu0 %v5728_v37  ;;  %2995 = vmatprep.subr.bf16.mxu1 %v5731_v38  ;;  %v5812_v37 = vld [vmem:[#allocation11 + $0x164] ss:$16 sps:$4 sm:$0xff]   ;;  %v5815_v38 = vld [vmem:[#allocation11 + $0x16c] ss:$16 sps:$4 sm:$0xff]  }
 0x2b2   :  { %2914 = vmatpush1.bf16.msra.mxu0 %v5726_v39  ;;  %2996 = vmatpush1.bf16.msra.mxu1 %v5729_v40  ;;  %v5810_v39 = vld [vmem:[#allocation11 + $0x160] ss:$16 sps:$4 sm:$0xff]   ;;  %v5813_v40 = vld [vmem:[#allocation11 + $0x168] ss:$16 sps:$4 sm:$0xff]  }
 0x2b3   :  { %2915 = vmatprep.subr.bf16.mxu0 %v5734_v42  ;;  %2997 = vmatprep.subr.bf16.mxu1 %v5737_v43  ;;  %v5821_v42 = vld [vmem:[#allocation11 + $0x18c] ss:$16 sps:$4 sm:$0xff]   ;;  %v5816_v43 = vld [vmem:[#allocation11 + $0x180] ss:$16 sps:$4 sm:$0xff]  }
 0x2b6   :  { %2916 = vmatpush1.bf16.msra.mxu0 %v5732_v44  ;;  %2998 = vmatpush1.bf16.msra.mxu1 %v5735_v19  ;;  %v5819_v44 = vld [vmem:[#allocation11 + $0x188] ss:$16 sps:$4 sm:$0xff]   ;;  %v5824_v19 = vld [vmem:[#allocation11 + $0x1a4] ss:$16 sps:$4 sm:$0xff]  }
 0x2b7   :  { %2917 = vmatprep.subr.bf16.mxu0 %v5740_v46  ;;  %2999 = vmatprep.subr.bf16.mxu1 %v5743_v47  ;;  %v5822_v46 = vld [vmem:[#allocation11 + $0x1a0] ss:$16 sps:$4 sm:$0xff]   ;;  %v5825_v47 = vld [vmem:[#allocation11 + $0x1a8] ss:$16 sps:$4 sm:$0xff]  }
 0x2ba   :  { %2918 = vmatpush1.bf16.msra.mxu0 %v5738_v48  ;;  %3000 = vmatpush1.bf16.msra.mxu1 %v5741_v49  ;;  %v5830_v48 = vld [vmem:[#allocation11 + $0x1c4] ss:$16 sps:$4 sm:$0xff]   ;;  %v5833_v49 = vld [vmem:[#allocation11 + $0x1cc] ss:$16 sps:$4 sm:$0xff]  }
 0x2bb   :  { %3808 = vmatprep.subr.bf16.mxu0 %v5746_v21  ;;  %3890 = vmatprep.subr.bf16.mxu1 %v5749_v51  ;;  %v5831_v21 = vld [vmem:[#allocation11 + $0x1c8] ss:$16 sps:$4 sm:$0xff]   ;;  %v5836_v51 = vld [vmem:[#allocation11 + $0x1e4] ss:$16 sps:$4 sm:$0xff]  }
 0x2bd   :  { %2920 = vmatmul.mubr.bf16.vlgmr.msra.gmra.mrb[4].mxu0 %v2054_v54  ;;  %3002 = vmatmul.mubr.bf16.vlgmr.msra.gmra.mrb[4].mxu1 %v2054_v54  ;;  %v5837_v54 = vld [vmem:[#allocation11 + $0x1e8] ss:$16 sps:$4 sm:$0xff]  }
 0x2be   :  { %3809 = vmatpush1.bf16.msra.mxu0 %v5744_v52  ;;  %3891 = vmatpush1.bf16.msra.mxu1 %v5747_v53  ;;  %v5839_v52 = vld [vmem:[#allocation11 + $0x1ec] ss:$16 sps:$4 sm:$0xff]   ;;  %v5834_v53 = vld [vmem:[#allocation11 + $0x1e0] ss:$16 sps:$4 sm:$0xff]  }
 0x2bf   :  { %3810 = vmatprep.subr.bf16.mxu0 %v5752_v28  ;;  %3892 = vmatprep.subr.bf16.mxu1 %v5755_v55  ;;  %v5842_v28 = vld [vmem:[#allocation11 + $0x204] ss:$16 sps:$4 sm:$0xff]   ;;  %v5845_v55 = vld [vmem:[#allocation11 + $0x20c] ss:$16 sps:$4 sm:$0xff]  }
 0x2c2   :  { %3811 = vmatpush1.bf16.msra.mxu0 %v5750_v56  ;;  %3893 = vmatpush1.bf16.msra.mxu1 %v5753_v57  ;;  %v6419_v56 = vld [vmem:[#allocation10] sm:$0xf] }
 0x2c3   :  { %3812 = vmatprep.subr.bf16.mxu0 %v5758_v58  ;;  %3894 = vmatprep.subr.bf16.mxu1 %v5761_v59  ;;  %v2189_v57 = vrot.slane %v6419_v56, %v6395_v20  ;;  %v2193_v58 = vrot.slane %v6419_v56, %v6400_v22  ;;  %v2201_v59 = vrot.slane %v6419_v56, %v6403_v23 }
 0x2c6   :  { %3813 = vmatpush1.bf16.msra.mxu0 %v5756_v60  ;;  %3895 = vmatpush1.bf16.msra.mxu1 %v5759_v61 }
 0x2c7   :  { %3814 = vmatprep.subr.bf16.mxu0 %v5764_v62  ;;  %3896 = vmatprep.subr.bf16.mxu1 %v5767_v63 }
 0x2ca   :  { %3815 = vmatpush1.bf16.msra.mxu0 %v5762_v0  ;;  %3897 = vmatpush1.bf16.msra.mxu1 %v5765_v1 }
 0x2cb   :  { %3816 = vmatprep.subr.bf16.mxu0 %v5770_v2  ;;  %3898 = vmatprep.subr.bf16.mxu1 %v5773_v3 }
 0x2ce   :  { %3817 = vmatpush1.bf16.msra.mxu0 %v5768_v4  ;;  %3899 = vmatpush1.bf16.msra.mxu1 %v5771_v5 }
 0x2cf   :  { %3818 = vmatprep.subr.bf16.mxu0 %v5776_v6  ;;  %3900 = vmatprep.subr.bf16.mxu1 %v5779_v7 }
 0x2d2   :  { %3819 = vmatpush1.bf16.msra.mxu0 %v5774_v8  ;;  %3901 = vmatpush1.bf16.msra.mxu1 %v5777_v9 }
 0x2d3   :  { %3820 = vmatprep.subr.bf16.mxu0 %v5782_v10  ;;  %3902 = vmatprep.subr.bf16.mxu1 %v5785_v11  ;;  %v5840_v11 = vld [vmem:[#allocation11 + $0x200] ss:$16 sps:$4 sm:$0xff]  }
 0x2d6   :  { %3821 = vmatpush1.bf16.msra.mxu0 %v5780_v12  ;;  %3903 = vmatpush1.bf16.msra.mxu1 %v5783_v13  ;;  %v5843_v12 = vld [vmem:[#allocation11 + $0x208] ss:$16 sps:$4 sm:$0xff]  }
 0x2d7   :  { %3822 = vmatprep.subr.bf16.mxu0 %v5788_v14  ;;  %3904 = vmatprep.subr.bf16.mxu1 %v5791_v15  ;;  %v5848_v14 = vld [vmem:[#allocation11 + $0x224] ss:$16 sps:$4 sm:$0xff]   ;;  %v5851_v15 = vld [vmem:[#allocation11 + $0x22c] ss:$16 sps:$4 sm:$0xff]  }
 0x2da   :  { %3823 = vmatpush1.bf16.msra.mxu0 %v5786_v16  ;;  %3905 = vmatpush1.bf16.msra.mxu1 %v5789_v17  ;;  %v5846_v17 = vld [vmem:[#allocation11 + $0x220] ss:$16 sps:$4 sm:$0xff]  }
 0x2db   :  { %3824 = vmatprep.subr.bf16.mxu0 %v5794_v18  ;;  %3906 = vmatprep.subr.bf16.mxu1 %v5797_v24  ;;  %v5849_v18 = vld [vmem:[#allocation11 + $0x228] ss:$16 sps:$4 sm:$0xff]   ;;  %v5854_v24 = vld [vmem:[#allocation11 + $0x244] ss:$16 sps:$4 sm:$0xff]  }
 0x2de   :  { %3825 = vmatpush1.bf16.msra.mxu0 %v5792_v25  ;;  %3907 = vmatpush1.bf16.msra.mxu1 %v5795_v26  ;;  %v5857_v25 = vld [vmem:[#allocation11 + $0x24c] ss:$16 sps:$4 sm:$0xff]   ;;  %v5852_v26 = vld [vmem:[#allocation11 + $0x240] ss:$16 sps:$4 sm:$0xff]  }
 0x2df   :  { %3826 = vmatprep.subr.bf16.mxu0 %v5800_v27  ;;  %3908 = vmatprep.subr.bf16.mxu1 %v5803_v29  ;;  %v5855_v27 = vld [vmem:[#allocation11 + $0x248] ss:$16 sps:$4 sm:$0xff]   ;;  %v5860_v29 = vld [vmem:[#allocation11 + $0x264] ss:$16 sps:$4 sm:$0xff]  }
 0x2e2   :  { %3827 = vmatpush1.bf16.msra.mxu0 %v5798_v30  ;;  %3909 = vmatpush1.bf16.msra.mxu1 %v5801_v31  ;;  %v5863_v30 = vld [vmem:[#allocation11 + $0x26c] ss:$16 sps:$4 sm:$0xff]   ;;  %v5858_v31 = vld [vmem:[#allocation11 + $0x260] ss:$16 sps:$4 sm:$0xff]  }
 0x2e3   :  { %3828 = vmatprep.subr.bf16.mxu0 %v5806_v32  ;;  %3910 = vmatprep.subr.bf16.mxu1 %v5809_v33  ;;  %v5861_v32 = vld [vmem:[#allocation11 + $0x268] ss:$16 sps:$4 sm:$0xff]   ;;  %v5866_v33 = vld [vmem:[#allocation11 + $0x284] ss:$16 sps:$4 sm:$0xff]  }
 0x2e6   :  { %3829 = vmatpush1.bf16.msra.mxu0 %v5804_v34  ;;  %3911 = vmatpush1.bf16.msra.mxu1 %v5807_v35  ;;  %v5869_v34 = vld [vmem:[#allocation11 + $0x28c] ss:$16 sps:$4 sm:$0xff]   ;;  %v5864_v35 = vld [vmem:[#allocation11 + $0x280] ss:$16 sps:$4 sm:$0xff]  }
 0x2e7   :  { %3830 = vmatprep.subr.bf16.mxu0 %v5812_v37  ;;  %3912 = vmatprep.subr.bf16.mxu1 %v5815_v38  ;;  %v5867_v37 = vld [vmem:[#allocation11 + $0x288] ss:$16 sps:$4 sm:$0xff]   ;;  %v5872_v38 = vld [vmem:[#allocation11 + $0x2a4] ss:$16 sps:$4 sm:$0xff]  }
 0x2ea   :  { %3831 = vmatpush1.bf16.msra.mxu0 %v5810_v39  ;;  %3913 = vmatpush1.bf16.msra.mxu1 %v5813_v40  ;;  %v5875_v39 = vld [vmem:[#allocation11 + $0x2ac] ss:$16 sps:$4 sm:$0xff]   ;;  %v5870_v40 = vld [vmem:[#allocation11 + $0x2a0] ss:$16 sps:$4 sm:$0xff]  }
 0x2eb   :  { %3832 = vmatprep.subr.bf16.mxu0 %v5818_v41  ;;  %3914 = vmatprep.subr.bf16.mxu1 %v5821_v42  ;;  %v5873_v41 = vld [vmem:[#allocation11 + $0x2a8] ss:$16 sps:$4 sm:$0xff]   ;;  %v5878_v42 = vld [vmem:[#allocation11 + $0x2c4] ss:$16 sps:$4 sm:$0xff]  }
 0x2ee   :  { %3833 = vmatpush1.bf16.msra.mxu0 %v5816_v43  ;;  %3915 = vmatpush1.bf16.msra.mxu1 %v5819_v44  ;;  %v5881_v43 = vld [vmem:[#allocation11 + $0x2cc] ss:$16 sps:$4 sm:$0xff]   ;;  %v5876_v44 = vld [vmem:[#allocation11 + $0x2c0] ss:$16 sps:$4 sm:$0xff]  }
 0x2ef   :  { %3834 = vmatprep.subr.bf16.mxu0 %v5824_v19  ;;  %3916 = vmatprep.subr.bf16.mxu1 %v5827_v45  ;;  %v5879_v19 = vld [vmem:[#allocation11 + $0x2c8] ss:$16 sps:$4 sm:$0xff]   ;;  %v5884_v45 = vld [vmem:[#allocation11 + $0x2e4] ss:$16 sps:$4 sm:$0xff]  }
 0x2f2   :  { %3835 = vmatpush1.bf16.msra.mxu0 %v5822_v46  ;;  %3917 = vmatpush1.bf16.msra.mxu1 %v5825_v47  ;;  %v5887_v46 = vld [vmem:[#allocation11 + $0x2ec] ss:$16 sps:$4 sm:$0xff]   ;;  %v5882_v47 = vld [vmem:[#allocation11 + $0x2e0] ss:$16 sps:$4 sm:$0xff]  }
 0x2f3   :  { %3836 = vmatprep.subr.bf16.mxu0 %v5830_v48  ;;  %3918 = vmatprep.subr.bf16.mxu1 %v5833_v49  ;;  %v5885_v48 = vld [vmem:[#allocation11 + $0x2e8] ss:$16 sps:$4 sm:$0xff]   ;;  %v5890_v49 = vld [vmem:[#allocation11 + $0x304] ss:$16 sps:$4 sm:$0xff]  }
 0x2f6   :  { %3837 = vmatpush1.bf16.msra.mxu0 %v5828_v50  ;;  %3919 = vmatpush1.bf16.msra.mxu1 %v5831_v21  ;;  %v5893_v50 = vld [vmem:[#allocation11 + $0x30c] ss:$16 sps:$4 sm:$0xff]   ;;  %v5888_v21 = vld [vmem:[#allocation11 + $0x300] ss:$16 sps:$4 sm:$0xff]  }
 0x2f7   :  { %3838 = vmatprep.subr.bf16.mxu0 %v5836_v51  ;;  %3920 = vmatprep.subr.bf16.mxu1 %v5839_v52  ;;  %v5891_v51 = vld [vmem:[#allocation11 + $0x308] ss:$16 sps:$4 sm:$0xff]   ;;  %v5896_v52 = vld [vmem:[#allocation11 + $0x324] ss:$16 sps:$4 sm:$0xff]  }
 0x2fa   :  { %3839 = vmatpush1.bf16.msra.mxu0 %v5834_v53  ;;  %3921 = vmatpush1.bf16.msra.mxu1 %v5837_v54  ;;  %v5899_v53 = vld [vmem:[#allocation11 + $0x32c] ss:$16 sps:$4 sm:$0xff]   ;;  %v5894_v54 = vld [vmem:[#allocation11 + $0x320] ss:$16 sps:$4 sm:$0xff]  }
 0x2fb   :  { %3849 = vmatprep.subr.bf16.mxu0 %v5842_v28  ;;  %3931 = vmatprep.subr.bf16.mxu1 %v5845_v55  ;;  %v5897_v28 = vld [vmem:[#allocation11 + $0x328] ss:$16 sps:$4 sm:$0xff]   ;;  %v5902_v55 = vld [vmem:[#allocation11 + $0x344] ss:$16 sps:$4 sm:$0xff]  }
 0x390   :  { %v2921_v60 = vpop.f32.mrb[4].mxu0  ;;  %v6427_v61 = vpop.f32.mrb[4].mxu1 }
 0x391   :  { %v5105_v62 = vadd.f32 %v2921_v60, %v2189_v57  ;;  %v2923_v63 = vpop.f32.mrb[5].mxu0  ;;  %v3005_v0 = vpop.f32.mrb[5].mxu1  ;;  %v5905_v57 = vld [vmem:[#allocation11 + $0x34c] ss:$16 sps:$4 sm:$0xff]   ;;  %v5908_v60 = vld [vmem:[#allocation11 + $0x364] ss:$16 sps:$4 sm:$0xff]  }
 0x392   :  { %v5106_v1 = vadd.f32 %v2923_v63, %v2193_v58  ;;  %v5108_v2 = vadd.f32 %v3005_v0, %v2201_v59  ;;  %v2925_v3 = vpop.f32.mrb[6].mxu0  ;;  %v3007_v4 = vpop.f32.mrb[6].mxu1  ;;  %v5900_v58 = vld [vmem:[#allocation11 + $0x340] ss:$16 sps:$4 sm:$0xff]   ;;  %v5903_v59 = vld [vmem:[#allocation11 + $0x348] ss:$16 sps:$4 sm:$0xff]  }
 0x393   :  { %v3010_v5 = vmax.f32 %v5105_v62, 0.0  ;;  %v2926_v6 = vpop.f32.mrb[7].mxu0  ;;  %v3008_v7 = vpop.f32.mrb[7].mxu1  ;;  %v5911_v62 = vld [vmem:[#allocation11 + $0x36c] ss:$16 sps:$4 sm:$0xff]  }
 0x394   :  { %v3011_v8 = vmax.f32 %v5106_v1, 0.0  ;;  %v3013_v9 = vmax.f32 %v5108_v2, 0.0  ;;  %v5906_v63 = vld [vmem:[#allocation11 + $0x360] ss:$16 sps:$4 sm:$0xff]   ;;  %v5909_v0 = vld [vmem:[#allocation11 + $0x368] ss:$16 sps:$4 sm:$0xff]  }
 0x395   :  { %v3014_v13 = vpack.c.bf16 %v3010_v5, %v3010_v5  ;;  %v5914_v1 = vld [vmem:[#allocation11 + $0x384] ss:$16 sps:$4 sm:$0xff]   ;;  %v5917_v2 = vld [vmem:[#allocation11 + $0x38c] ss:$16 sps:$4 sm:$0xff]   ;;  %v5912_v3 = vld [vmem:[#allocation11 + $0x380] ss:$16 sps:$4 sm:$0xff]  }
 0x396   :  { %v3015_v10 = vpack.c.bf16 %v3011_v8, %v3011_v8  ;;  %v3017_v16 = vpack.c.bf16 %v3013_v9, %v3013_v9  ;;  %v5915_v4 = vld [vmem:[#allocation11 + $0x388] ss:$16 sps:$4 sm:$0xff]   ;;  %v5920_v5 = vld [vmem:[#allocation11 + $0x3a4] ss:$16 sps:$4 sm:$0xff]   ;;  %v5923_v6 = vld [vmem:[#allocation11 + $0x3ac] ss:$16 sps:$4 sm:$0xff]   ;;  %v2197_v9 = vrot.slane %v6419_v56, %v6414_v36 }
 0x397   :  { %v5918_v7 = vld [vmem:[#allocation11 + $0x3a0] ss:$16 sps:$4 sm:$0xff]   ;;  %v5921_v8 = vld [vmem:[#allocation11 + $0x3a8] ss:$16 sps:$4 sm:$0xff]  }
 0x398   :  { %3840 = vmatprep.mubr.bf16.mxu0 %v3015_v10  ;;  %3922 = vmatprep.mubr.bf16.mxu1 %v3015_v10  ;;  %v5926_v10 = vld [vmem:[#allocation11 + $0x3c4] ss:$16 sps:$4 sm:$0xff]  }
 0x399   :  { %3841 = vmatmul.mubr.bf16.vlgmr.msra.gmra.mrb[8].mxu0 %v3014_v13  ;;  %3923 = vmatmul.mubr.bf16.vlgmr.msra.gmra.mrb[8].mxu1 %v3014_v13  ;;  %v5927_v13 = vld [vmem:[#allocation11 + $0x3c8] ss:$16 sps:$4 sm:$0xff]  }
 0x39a   :  { %3850 = vmatpush1.bf16.msra.mxu0 %v5840_v11  ;;  %3932 = vmatpush1.bf16.msra.mxu1 %v5843_v12  ;;  %v5929_v11 = vld [vmem:[#allocation11 + $0x3cc] ss:$16 sps:$4 sm:$0xff]   ;;  %v5924_v12 = vld [vmem:[#allocation11 + $0x3c0] ss:$16 sps:$4 sm:$0xff]  }
 0x39b   :  { %3881 = vmatprep.mubr.bf16.mxu0 %v3017_v16  ;;  %3963 = vmatprep.mubr.bf16.mxu1 %v3017_v16  ;;  %v5935_v16 = vld [vmem:[#allocation11 + $0x3ec] ss:$16 sps:$4 sm:$0xff]  }
 0x39c   :  { %3851 = vmatprep.subr.bf16.mxu0 %v5848_v14  ;;  %3933 = vmatprep.subr.bf16.mxu1 %v5851_v15  ;;  %v5107_v14 = vadd.f32 %v6427_v61, %v2197_v9  ;;  %v5932_v15 = vld [vmem:[#allocation11 + $0x3e4] ss:$16 sps:$4 sm:$0xff]  }
 0x39d   :  { %v5939_v61 = vld [vmem:[#allocation14 + $0x80] sm:$0xff]  }
 0x39e   :  { %3852 = vmatpush1.bf16.msra.mxu0 %v5846_v17  ;;  %3934 = vmatpush1.bf16.msra.mxu1 %v5849_v18  ;;  %v5930_v17 = vld [vmem:[#allocation11 + $0x3e0] ss:$16 sps:$4 sm:$0xff]   ;;  %v5933_v18 = vld [vmem:[#allocation11 + $0x3e8] ss:$16 sps:$4 sm:$0xff]  }
 0x39f   :  { %3853 = vmatprep.subr.bf16.mxu0 %v5854_v24  ;;  %3935 = vmatprep.subr.bf16.mxu1 %v5857_v25  ;;  %v3012_v24 = vmax.f32 %v5107_v14, 0.0  ;;  %v5936_v25 = vld [vmem:[#allocation14 + $0x40] sm:$0xff]  }
 0x3a1   :  { %v3016_v56 = vpack.c.bf16 %v3012_v24, %v3012_v24 }
 0x3a2   :  { %3854 = vmatpush1.bf16.msra.mxu0 %v5852_v26  ;;  %3936 = vmatpush1.bf16.msra.mxu1 %v5855_v27  ;;  %v5937_v26 = vld [vmem:[#allocation14 + $0xc0] sm:$0xff]  }
 0x3a3   :  { %3855 = vmatprep.subr.bf16.mxu0 %v5860_v29  ;;  %3937 = vmatprep.subr.bf16.mxu1 %v5863_v30  ;;  %v5938_v27 = vld [vmem:[#allocation14] sm:$0xff]   ;;  %v5940_v29 = vld [vmem:[#allocation14 + $0x48] sm:$0xff]  }
 0x3a4   :  { %v5941_v30 = vld [vmem:[#allocation14 + $0xc8] sm:$0xff]  }
 0x3a6   :  { %3856 = vmatpush1.bf16.msra.mxu0 %v5858_v31  ;;  %3938 = vmatpush1.bf16.msra.mxu1 %v5861_v32  ;;  %v5942_v31 = vld [vmem:[#allocation14 + $0x8] sm:$0xff]  }
 0x3a7   :  { %3857 = vmatprep.subr.bf16.mxu0 %v5866_v33  ;;  %3939 = vmatprep.subr.bf16.mxu1 %v5869_v34  ;;  %v5943_v32 = vld [vmem:[#allocation14 + $0x88] sm:$0xff]   ;;  %v5944_v33 = vld [vmem:[#allocation14 + $0x50] sm:$0xff]  }
 0x3a8   :  { %v5945_v34 = vld [vmem:[#allocation14 + $0xd0] sm:$0xff]  }
 0x3aa   :  { %3858 = vmatpush1.bf16.msra.mxu0 %v5864_v35  ;;  %3940 = vmatpush1.bf16.msra.mxu1 %v5867_v37  ;;  %v5946_v35 = vld [vmem:[#allocation14 + $0x10] sm:$0xff]  }
 0x3ab   :  { %3859 = vmatprep.subr.bf16.mxu0 %v5872_v38  ;;  %3941 = vmatprep.subr.bf16.mxu1 %v5875_v39  ;;  %v5947_v37 = vld [vmem:[#allocation14 + $0x90] sm:$0xff]   ;;  %v5948_v38 = vld [vmem:[#allocation14 + $0x58] sm:$0xff]  }
 0x3ac   :  { %v5949_v39 = vld [vmem:[#allocation14 + $0xd8] sm:$0xff]  }
 0x3ae   :  { %3860 = vmatpush1.bf16.msra.mxu0 %v5870_v40  ;;  %3942 = vmatpush1.bf16.msra.mxu1 %v5873_v41  ;;  %v3146_v40 = vld [vmem:[#allocation13] sm:$0xf] }
 0x3af   :  { %3861 = vmatprep.subr.bf16.mxu0 %v5878_v42  ;;  %3943 = vmatprep.subr.bf16.mxu1 %v5881_v43  ;;  %v3151_v41 = vrot.slane %v3146_v40, %v6395_v20  ;;  %v3159_v42 = vrot.slane %v3146_v40, %v6414_v36  ;;  %v3155_v43 = vrot.slane %v3146_v40, %v6400_v22  ;;  %v5950_v36 = vld [vmem:[#allocation14 + $0x18] sm:$0xff]  }
 0x3b0   :  { %v5951_v22 = vld [vmem:[#allocation14 + $0x98] sm:$0xff]  }
 0x3b2   :  { %3862 = vmatpush1.bf16.msra.mxu0 %v5876_v44  ;;  %3944 = vmatpush1.bf16.msra.mxu1 %v5879_v19  ;;  %v3163_v44 = vrot.slane %v3146_v40, %v6403_v23  ;;  %v5952_v23 = vld [vmem:[#allocation14 + $0x60] sm:$0xff]  }
 0x3b3   :  { %3863 = vmatprep.subr.bf16.mxu0 %v5884_v45  ;;  %3945 = vmatprep.subr.bf16.mxu1 %v5887_v46 }
 0x3b6   :  { %3864 = vmatpush1.bf16.msra.mxu0 %v5882_v47  ;;  %3946 = vmatpush1.bf16.msra.mxu1 %v5885_v48 }
 0x3b7   :  { %3865 = vmatprep.subr.bf16.mxu0 %v5890_v49  ;;  %3947 = vmatprep.subr.bf16.mxu1 %v5893_v50 }
 0x3ba   :  { %3866 = vmatpush1.bf16.msra.mxu0 %v5888_v21  ;;  %3948 = vmatpush1.bf16.msra.mxu1 %v5891_v51 }
 0x3bb   :  { %3867 = vmatprep.subr.bf16.mxu0 %v5896_v52  ;;  %3949 = vmatprep.subr.bf16.mxu1 %v5899_v53 }
 0x3be   :  { %3868 = vmatpush1.bf16.msra.mxu0 %v5894_v54  ;;  %3950 = vmatpush1.bf16.msra.mxu1 %v5897_v28 }
 0x3bf   :  { %3869 = vmatprep.subr.bf16.mxu0 %v5902_v55  ;;  %3951 = vmatprep.subr.bf16.mxu1 %v5905_v57  ;;  %v5953_v57 = vld [vmem:[#allocation14 + $0xe0] sm:$0xff]  }
 0x3c2   :  { %3870 = vmatpush1.bf16.msra.mxu0 %v5900_v58  ;;  %3952 = vmatpush1.bf16.msra.mxu1 %v5903_v59  ;;  %v5954_v58 = vld [vmem:[#allocation14 + $0x20] sm:$0xff]  }
 0x3c3   :  { %3871 = vmatprep.subr.bf16.mxu0 %v5908_v60  ;;  %3953 = vmatprep.subr.bf16.mxu1 %v5911_v62  ;;  %v5955_v59 = vld [vmem:[#allocation14 + $0xa0] sm:$0xff]   ;;  %v5956_v60 = vld [vmem:[#allocation14 + $0x68] sm:$0xff]  }
 0x3c4   :  { %v5957_v62 = vld [vmem:[#allocation14 + $0xe8] sm:$0xff]  }
 0x3c6   :  { %3872 = vmatpush1.bf16.msra.mxu0 %v5906_v63  ;;  %3954 = vmatpush1.bf16.msra.mxu1 %v5909_v0  ;;  %v5958_v63 = vld [vmem:[#allocation14 + $0x28] sm:$0xff]  }
 0x3c7   :  { %3873 = vmatprep.subr.bf16.mxu0 %v5914_v1  ;;  %3955 = vmatprep.subr.bf16.mxu1 %v5917_v2  ;;  %v5959_v0 = vld [vmem:[#allocation14 + $0xa8] sm:$0xff]   ;;  %v5960_v1 = vld [vmem:[#allocation14 + $0x70] sm:$0xff]  }
 0x3c8   :  { %v5961_v2 = vld [vmem:[#allocation14 + $0xf0] sm:$0xff]  }
 0x3ca   :  { %3874 = vmatpush1.bf16.msra.mxu0 %v5912_v3  ;;  %3956 = vmatpush1.bf16.msra.mxu1 %v5915_v4  ;;  %v5962_v3 = vld [vmem:[#allocation14 + $0x30] sm:$0xff]  }
 0x3cb   :  { %3875 = vmatprep.subr.bf16.mxu0 %v5920_v5  ;;  %3957 = vmatprep.subr.bf16.mxu1 %v5923_v6  ;;  %v5963_v4 = vld [vmem:[#allocation14 + $0xb0] sm:$0xff]   ;;  %v5964_v5 = vld [vmem:[#allocation14 + $0x78] sm:$0xff]  }
 0x3cc   :  { %v5965_v6 = vld [vmem:[#allocation14 + $0xf8] sm:$0xff]  }
 0x3ce   :  { %3876 = vmatpush1.bf16.msra.mxu0 %v5918_v7  ;;  %3958 = vmatpush1.bf16.msra.mxu1 %v5921_v8  ;;  %v5966_v7 = vld [vmem:[#allocation14 + $0x38] sm:$0xff]  }
 0x3cf   :  { %3877 = vmatprep.subr.bf16.mxu0 %v5926_v10  ;;  %3959 = vmatprep.subr.bf16.mxu1 %v5929_v11  ;;  %v5967_v8 = vld [vmem:[#allocation14 + $0xb8] sm:$0xff]  }
 0x3d2   :  { %3878 = vmatpush1.bf16.msra.mxu0 %v5924_v12  ;;  %3960 = vmatpush1.bf16.msra.mxu1 %v5927_v13 }
 0x3d3   :  { %3879 = vmatprep.subr.bf16.mxu0 %v5932_v15  ;;  %3961 = vmatprep.subr.bf16.mxu1 %v5935_v16 }
 0x3d6   :  { %3880 = vmatpush1.bf16.msra.mxu0 %v5930_v17  ;;  %3962 = vmatpush1.bf16.msra.mxu1 %v5933_v18 }
 0x3d7   :  { %5057 = vmatprep.subr.bf16.mxu0 %v5936_v25  ;;  %5079 = vmatprep.subr.bf16.mxu1 %v5937_v26 }
 0x3d9   :  { %3882 = vmatmul.mubr.bf16.vlgmr.msra.gmra.mrb[8].mxu0 %v3016_v56  ;;  %3964 = vmatmul.mubr.bf16.vlgmr.msra.gmra.mrb[8].mxu1 %v3016_v56 }
 0x3da   :  { %5058 = vmatpush3.bf16.msra.mxu0 %v5938_v27  ;;  %5080 = vmatpush3.bf16.msra.mxu1 %v5939_v61 }
 0x3db   :  { %5059 = vmatprep.subr.bf16.mxu0 %v5940_v29  ;;  %5081 = vmatprep.subr.bf16.mxu1 %v5941_v30  ;;  %v4335_v30 = vld [vmem:[#allocation16 + $0x8] sm:$0xff] }
 0x3de   :  { %5060 = vmatpush3.bf16.msra.mxu0 %v5942_v31  ;;  %5082 = vmatpush3.bf16.msra.mxu1 %v5943_v32  ;;  %v4337_v31 = vld [vmem:[#allocation16 + $0x18] sm:$0xff]  ;;  %v4334_v32 = vld [vmem:[#allocation16] sm:$0xff] }
 0x3df   :  { %5061 = vmatprep.subr.bf16.mxu0 %v5944_v33  ;;  %5083 = vmatprep.subr.bf16.mxu1 %v5945_v34  ;;  %v4336_v33 = vld [vmem:[#allocation16 + $0x10] sm:$0xff]  ;;  %v6223_v34 = vmov 0.0  }
 0x3e2   :  { %5062 = vmatpush3.bf16.msra.mxu0 %v5946_v35  ;;  %5084 = vmatpush3.bf16.msra.mxu1 %v5947_v37 }
 0x3e3   :  { %5063 = vmatprep.subr.bf16.mxu0 %v5948_v38  ;;  %5085 = vmatprep.subr.bf16.mxu1 %v5949_v39 }
 0x3e6   :  { %5064 = vmatpush3.bf16.msra.mxu0 %v5950_v36  ;;  %5086 = vmatpush3.bf16.msra.mxu1 %v5951_v22 }
 0x3e7   :  { %5065 = vmatprep.subr.bf16.mxu0 %v5952_v23  ;;  %5087 = vmatprep.subr.bf16.mxu1 %v5953_v57 }
 0x3ea   :  { %5066 = vmatpush3.bf16.msra.mxu0 %v5954_v58  ;;  %5088 = vmatpush3.bf16.msra.mxu1 %v5955_v59 }
 0x3eb   :  { %5067 = vmatprep.subr.bf16.mxu0 %v5956_v60  ;;  %5089 = vmatprep.subr.bf16.mxu1 %v5957_v62 }
 0x3ee   :  { %5068 = vmatpush3.bf16.msra.mxu0 %v5958_v63  ;;  %5090 = vmatpush3.bf16.msra.mxu1 %v5959_v0 }
 0x3ef   :  { %5069 = vmatprep.subr.bf16.mxu0 %v5960_v1  ;;  %5091 = vmatprep.subr.bf16.mxu1 %v5961_v2 }
 0x3f2   :  { %5070 = vmatpush3.bf16.msra.mxu0 %v5962_v3  ;;  %5092 = vmatpush3.bf16.msra.mxu1 %v5963_v4 }
 0x3f3   :  { %5071 = vmatprep.subr.bf16.mxu0 %v5964_v5  ;;  %5093 = vmatprep.subr.bf16.mxu1 %v5965_v6 }
 0x3f6   :  { %5072 = vmatpush3.bf16.msra.mxu0 %v5966_v7  ;;  %5094 = vmatpush3.bf16.msra.mxu1 %v5967_v8 }
 0x3f7   :  { %4342 = vmatprep.subr.mxu0 %v4335_v30  ;;  %4413 = vmatprep.subr.mxu1 %v4337_v31 }
 0x4ac   :  { %v3883_v19 = vpop.f32.mrb[8].mxu0  ;;  %v3965_v45 = vpop.f32.mrb[8].mxu1 }
 0x4ad   :  { %v5109_v46 = vadd.f32 %v3883_v19, %v3151_v41  ;;  %v5111_v47 = vadd.f32 %v3965_v45, %v3159_v42  ;;  %v3885_v48 = vpop.f32.mrb[9].mxu0  ;;  %v3967_v49 = vpop.f32.mrb[9].mxu1 }
 0x4ae   :  { %v5110_v50 = vadd.f32 %v3885_v48, %v3155_v43  ;;  %v5112_v21 = vadd.f32 %v3967_v49, %v3163_v44  ;;  %v3887_v51 = vpop.f32.mrb[10].mxu0  ;;  %v3969_v52 = vpop.f32.mrb[10].mxu1 }
 0x4af   :  { %v3888_v53 = vpop.f32.mrb[11].mxu0  ;;  %v3970_v54 = vpop.f32.mrb[11].mxu1 }
 0x4b0   :  { %v3972_v28 = vmax.f32 %v5109_v46, %v5110_v50  ;;  %v3973_v20 = vmax.f32 %v5111_v47, %v5112_v21 }
 0x4b2   :  { %v3974_v55 = vmax.f32 %v3972_v28, %v3973_v20 }
 0x4b4   :  { %3975 = vmax.xlane.f32.xlu0 %v3974_v55 }
 0x541   :  { %v3976_v9 = vpop.xlane.xlu0 %3975 }
 0x542   :  { %v3977_v10 = vsub.f32 %v5109_v46, %v3976_v9  ;;  %v3978_v11 = vsub.f32 %v5110_v50, %v3976_v9  ;;  %v3979_v12 = vsub.f32 %v5111_v47, %v3976_v9  ;;  %v3980_v13 = vsub.f32 %v5112_v21, %v3976_v9 }
 0x544   :  { %v3981_v14 = vmul.f32 1.442695, %v3977_v10  ;;  %v3983_v15 = vmul.f32 1.442695, %v3978_v11  ;;  %v3985_v16 = vmul.f32 1.442695, %v3979_v12 }
 0x545   :  { %v3987_v17 = vmul.f32 1.442695, %v3980_v13 }
 0x546   :  { %5968 = vpow2.f32 %v3981_v14 }
 0x547   :  { %5970 = vpow2.f32 %v3983_v15 }
 0x548   :  { %5972 = vpow2.f32 %v3985_v16 }
 0x549   :  { %5974 = vpow2.f32 %v3987_v17 }
 0x550   :  { %v5969_v18 = vpop.eup %5968 }
 0x551   :  { %v5971_v24 = vpop.eup %5970  ;;  %v3989_v56 = vpack.c.bf16 %v5969_v18, %v5969_v18 }
 0x552   :  { %v5973_v25 = vpop.eup %5972  ;;  %v3990_v26 = vpack.c.bf16 %v5971_v24, %v5971_v24 }
 0x553   :  { %v5975_v27 = vpop.eup %5974  ;;  %v3991_v61 = vpack.c.bf16 %v5973_v25, %v5973_v25 }
 0x554   :  { %4281 = vmatprep.mubr.bf16.mxu0 %v3990_v26  ;;  %v3992_v29 = vpack.c.bf16 %v5975_v27, %v5975_v27 }
 0x555   :  { %4282 = vmatmul.mubr.bf16.vlgmr.msra.gmra.mrb[12].mxu0 %v3989_v56 }
 0x556   :  { %4321 = vmatprep.mubr.bf16.mxu1 %v3992_v29  ;;  %4343 = vmatpush1.msra.mxu0 %v4334_v32 }
 0x557   :  { %4322 = vmatmul.mubr.bf16.vlgmr.msra.gmra.mrb[12].mxu1 %v3991_v61  ;;  %4406 = vmatprep.mubr.f32.mxu0 %v6223_v34 }
 0x558   :  { %4414 = vmatpush1.msra.mxu1 %v4336_v33  ;;  %4477 = vmatprep.mubr.f32.mxu1 %v6223_v34 }
 0x628   :  { %v5073_v35 = vpop.f32.mrb[12].mxu0 }
 0x629   :  { %v5074_v37 = vpop.f32.mrb[13].mxu0 }
 0x62a   :  { %v5095_v38 = vpop.f32.mrb[12].mxu1  ;;  %v5075_v39 = vadd.f32 %v5074_v37, %v5073_v35  ;;  %v5076_v40 = vpop.f32.mrb[14].mxu0 }
 0x62b   :  { %v5096_v41 = vpop.f32.mrb[13].mxu1  ;;  %v5077_v42 = vpop.f32.mrb[15].mxu0 }
 0x62c   :  { %v5097_v43 = vadd.f32 %v5096_v41, %v5095_v38  ;;  %v5098_v44 = vpop.f32.mrb[14].mxu1 }
 0x62d   :  { %v5099_v19 = vpop.f32.mrb[15].mxu1 }
 0x62e   :  { %v4324_v45 = vadd.f32 %v5097_v43, %v5075_v39 }
 0x630   :  { %v4329_v46 = vmax.f32 %v4324_v45, 1e-30 }
 0x632   :  { %5976 = vrcp.f32 %v4329_v46 }
 0x63c   :  { %v5977_v47 = vpop.eup %5976 }
 0x63d   :  { %v4331_v48 = vmul.f32 %v5977_v47, %v4329_v46 }
 0x63f   :  { %v4332_v49 = vsub.f32 2.0, %v4331_v48 }
 0x641   :  { %v4333_v50 = vmul.f32 %v5977_v47, %v4332_v49 }
 0x643   :  { %5055 = vmatmul.mubr.msk.f32.vlgmr.msra.gmra.mrb[16].mxu0 %vm4338_vm0, %v4333_v50  ;;  %5056 = vmatmul.mubr.msk.f32.vlgmr.msra.gmra.mrb[16].mxu1 %vm4338_vm0, %v4333_v50 }
 0x716   :  { %v4408_v21 = vpop.f32.mrb[16].mxu0  ;;  %v4479_v51 = vpop.f32.mrb[16].mxu1 }
 0x717   :  { %v4484_v52 = vmul.f32 %v5969_v18, %v4408_v21  ;;  %v4486_v53 = vmul.f32 %v5973_v25, %v4479_v51  ;;  %v4410_v54 = vpop.f32.mrb[17].mxu0  ;;  %v4481_v28 = vpop.f32.mrb[17].mxu1 }
 0x718   :  { %v4485_v20 = vmul.f32 %v5971_v24, %v4410_v54  ;;  %v4487_v55 = vmul.f32 %v5975_v27, %v4481_v28 }
 0x719   :  { %4488 = vst [vmem:[#allocation17] sm:$0xff] %v4484_v52  ;;  %4490 = vst [vmem:[#allocation17 + $0x10] sm:$0xff] %v4486_v53 }
 0x71a   :  { %4489 = vst [vmem:[#allocation17 + $0x8] sm:$0xff] %v4485_v20  ;;  %4491 = vst [vmem:[#allocation17 + $0x18] sm:$0xff] %v4487_v55 }
 0x71b   :  { %6187 = shalt.err (!%p6184_p6)
}
 0x71c   :  { %s6188_s2 = scalar_lea.hbm %s6457_s9, 512 }
 0x71d   :  { %p6189_p7 = scmp.ne.s32.totalorder %s6457_s9, %s6188_s2  ;;  %p6192_p8 = scmp.lt.u32.totalorder %s6188_s2, %s6457_s9 }
 0x71f   :  { %p6194_p9 = pnand %p6192_p8, %p6189_p7 }
 0x721   :  { %6197 = shalt.err (!%p6194_p9)
}
 0x722   :  { %4501 = dma.vmem_to_hbm [thread:$0]  %s4499_s23, 512, %s6457_s9, [#allocation4]  }
 0x723   :  { %6208 = dma.done.wait [#allocation4], 512  }
 0x724   :  { %6209 = vsyncadd [#allocation4], 4294966784 }
 0x725   :  { %4505 = vsyncpa [#allocation3], 1 }
 0x726   :  { %4506 = vsyncpa [#allocation6], 1 }
 0x727   :  { %4507 = vsyncpa [#allocation9], 1 }
 0x728   :  { %4508 = vsyncpa [#allocation12], 1 }
 0x729   :  { %4509 = vsyncpa [#allocation15], 1 }
 0x72a   :  { %4510 = vsyncpa [#allocation4], 1 }

</bundles_post_ra>
